<compile_context>
chip_gen: v7x
topology: tpu7x:2x2x1
jax: 0.10.0
libtpu: 0.0.40
codegen_flags: <defaults>
</compile_context>

<pallas_src>
import functools

import jax
import jax.numpy as jnp
from jax.experimental import pallas as pl
from jax.experimental.pallas import tpu as pltpu

_EPS = 1e-8      # matches torch.nn.functional.cosine_similarity default eps
_LANE = 128      # TPU lane width; also the module's feature dim


def _boundary_kernel(dom_ref, delta_ref, x_ref, proto_ref,
                     loss_ref, mask_ref, proto_out_ref,
                     loss_acc, xsum_acc, *, n_valid):
    # dom_ref:   SMEM (1,)  int32 -> domain index (0 or 1)
    # delta_ref: SMEM (2,)  f32   -> raw delta parameter (pre-softplus)
    # x_ref:     VMEM (tile_n, D) -> pooled_output tile (last tile may be ragged)
    # proto_ref: VMEM (2, D)      -> prototype buffer
    # loss_ref:      VMEM (1, 1)
    # mask_ref:      VMEM (2, tile_n) -> row 0 = pos_mask, row 1 = neg_mask
    # proto_out_ref: VMEM (2, D)      -> full updated prototype
    # loss_acc: VMEM (1, tile_n) f32 scratch; xsum_acc: VMEM (1, D) f32 scratch
    i = pl.program_id(0)
    n_steps = pl.num_programs(0)
    tile_n, feat = x_ref.shape

    @pl.when(i == 0)
    def _init():
        loss_acc[...] = jnp.zeros_like(loss_acc)
        xsum_acc[...] = jnp.zeros_like(xsum_acc)

    dom = dom_ref[0]

    # softplus(delta[domain]): scalar select, transcendental on a (1, 1)
    # vector so exp/log ride the EUP (no scalar transcendentals).
    d_raw = jnp.where(dom == 0, delta_ref[0], delta_ref[1])
    d_vec = d_raw + jnp.zeros((1, 1), jnp.float32)
    d_sp = jnp.maximum(d_vec, 0.0) + jnp.log(1.0 + jnp.exp(-jnp.abs(d_vec)))  # (1,1)

    proto = proto_ref[...].astype(jnp.float32)                                # (2, D)
    sel = jax.lax.broadcasted_iota(jnp.int32, (2, 1), 0) == dom               # (2, 1)
    c = jnp.sum(jnp.where(sel, proto, 0.0), axis=0, keepdims=True)            # (1, D)

    # Row / lane validity for the (possibly ragged) last tile.
    row0 = i * tile_n
    row_ids = jax.lax.broadcasted_iota(jnp.int32, (tile_n, 1), 0) + row0      # (tile_n,1)
    lane_ids = jax.lax.broadcasted_iota(jnp.int32, (1, tile_n), 1) + row0     # (1,tile_n)
    row_valid = row_ids < n_valid
    validf = (lane_ids < n_valid).astype(jnp.float32)                         # (1,tile_n)

    # Zero out-of-range rows (uninitialised VMEM in the ragged tail) so the
    # MXU contractions below never touch garbage / NaN bit patterns.
    x = jnp.where(row_valid, x_ref[...].astype(jnp.float32), 0.0)             # (tile_n,D)

    # Per-row L2 distance, lane-dense, via an MXU contraction over the feature
    # dim (ones-vector matvec) instead of an XLU transpose + sublane reduce.
    diff = x - c
    euc2 = jax.lax.dot_general(
        jnp.ones((1, feat), jnp.float32), diff * diff,
        dimension_numbers=(((1,), (1,)), ((), ())),
        precision=jax.lax.Precision.HIGHEST,
        preferred_element_type=jnp.float32)                                   # (1,tile_n)
    euc = jnp.sqrt(euc2)

    posf = (euc < d_sp).astype(jnp.float32) * validf
    negf = (euc > d_sp).astype(jnp.float32) * validf

    # Single dense (2, tile_n) store per step.
    mask_ref[...] = jnp.concatenate([posf, negf], axis=0)

    # pos/neg losses are disjoint: on either side of the boundary the term is
    # |euc - d|.  One lane-wide accumulator; cross-lane reduce only at the end.
    loss_acc[...] += jnp.abs(euc - d_sp) * (posf + negf)

    # Column sum of the valid rows, also on the MXU (the row-valid vector
    # doubles as the ragged-tile mask).
    xsum_acc[...] += jax.lax.dot_general(
        validf, x,
        dimension_numbers=(((1,), (0,)), ((), ())),
        precision=jax.lax.Precision.HIGHEST,
        preferred_element_type=jnp.float32)                                   # (1, D)

    @pl.when(i == n_steps - 1)
    def _finalize():
        inv_n = 1.0 / n_valid
        loss_ref[...] = jnp.sum(loss_acc[...], keepdims=True) * inv_n

        # prototype[domain] <- c * cos(x_mean, c) + x_mean * (1 - cos(x_mean, c))
        x_mean = xsum_acc[...] * inv_n                                        # (1, D)
        dot = jnp.sum(x_mean * c)
        nx = jnp.maximum(jnp.sqrt(jnp.sum(x_mean * x_mean)), _EPS)
        nc = jnp.maximum(jnp.sqrt(jnp.sum(c * c)), _EPS)
        # Exact divide: runs once per call, keeps the cosine momentum bit-close
        # to the reference.
        momentum = dot / (nx * nc)
        new_row = c * momentum + x_mean * (1.0 - momentum)                    # (1, D)
        proto_out_ref[...] = jnp.where(sel, new_row, proto)


@functools.partial(jax.jit, static_argnames=("tile_rows",))
def boundary_loss_forward(pooled_output, domain, delta, prototype, *, tile_rows=4096):
    """Replicates BoundaryLoss.forward.

    Args:
      pooled_output: (N, 128) float32 or bfloat16 features (detached inside).
      domain:        scalar int32 (0 or 1).
      delta:         (2,) float32 raw parameter (softplus applied in-kernel).
      prototype:     (2, 128) float32 buffer.

    Returns:
      loss (scalar f32), pos_mask (N,), neg_mask (N,), new_prototype (2, 128)
    """
    if tile_rows % _LANE != 0:
        raise ValueError("tile_rows must be a multiple of 128")
    pooled_output = jax.lax.stop_gradient(pooled_output)          # .detach()
    n, feat = pooled_output.shape
    if prototype.shape != (2, feat):
        raise ValueError("prototype must have shape (2, feature_dim)")

    # No HBM padding copy: the grid is ceil(N / tile_n) blocks and the kernel
    # masks the ragged tail of the last tile itself.
    n_ceil = ((n + _LANE - 1) // _LANE) * _LANE
    tile_n = min(tile_rows, n_ceil)
    n_steps = (n + tile_n - 1) // tile_n

    dom_arr = jnp.asarray(domain, jnp.int32).reshape((1,))
    delta32 = jnp.asarray(delta, jnp.float32)
    proto32 = jnp.asarray(prototype, jnp.float32)

    kernel = functools.partial(_boundary_kernel, n_valid=n)

    loss, masks, new_prototype = pl.pallas_call(
        kernel,
        out_shape=(
            jax.ShapeDtypeStruct((1, 1), jnp.float32),        # loss
            jax.ShapeDtypeStruct((2, n), jnp.float32),        # pos/neg masks
            jax.ShapeDtypeStruct((2, feat), jnp.float32),     # updated prototype
        ),
        grid_spec=pltpu.PrefetchScalarGridSpec(
            num_scalar_prefetch=0,
            grid=(n_steps,),
            in_specs=[
                pl.BlockSpec(memory_space=pltpu.MemorySpace.SMEM),   # domain
                pl.BlockSpec(memory_space=pltpu.MemorySpace.SMEM),   # delta (raw)
                pl.BlockSpec((tile_n, feat), lambda i: (i, 0)),      # pooled_output tile
                pl.BlockSpec((2, feat), lambda i: (0, 0)),           # prototype
            ],
            out_specs=(
                pl.BlockSpec((1, 1), lambda i: (0, 0)),              # loss
                pl.BlockSpec((2, tile_n), lambda i: (0, i)),         # masks (lane-dense)
                pl.BlockSpec((2, feat), lambda i: (0, 0)),           # prototype out
            ),
            scratch_shapes=[
                pltpu.VMEM((1, tile_n), jnp.float32),   # fused |euc-d| accumulator
                pltpu.VMEM((1, feat), jnp.float32),     # running column sum of x
            ],
        ),
        compiler_params=pltpu.CompilerParams(
            dimension_semantics=("arbitrary",)),  # grid axis carries accumulators
    )(dom_arr, delta32, pooled_output, proto32)

    return loss[0, 0], masks[0, :], masks[1, :], new_prototype


def _reference(pooled_output, domain, delta, prototype):
    """Pure-JAX reference mirroring the PyTorch module."""
    x = pooled_output.astype(jnp.float32)
    d = jax.nn.softplus(delta)[domain]
    c = prototype[domain][None, :]
    euc = jnp.linalg.norm(x - c, ord=2, axis=1)
    neg_mask = (euc > d).astype(jnp.float32)
    pos_mask = (euc < d).astype(jnp.float32)
    loss = jnp.mean((d - euc) * pos_mask) + jnp.mean((euc - d) * neg_mask)
    xm = x.mean(0, keepdims=True)
    mom = jnp.sum(xm * c) / (jnp.maximum(jnp.linalg.norm(xm), _EPS)
                             * jnp.maximum(jnp.linalg.norm(c), _EPS))
    new_row = c * mom + xm * (1.0 - mom)
    return loss, pos_mask, neg_mask, prototype.at[domain].set(new_row[0])


if __name__ == "__main__":
    key = jax.random.PRNGKey(0)
    k_delta, k_x1, k_x2 = jax.random.split(key, 3)

    D = 128
    # Module __init__: delta ~ N(0,1), prototype = zeros(2, 128).
    delta = jax.random.normal(k_delta, (2,), jnp.float32)
    prototype = jnp.zeros((2, D), jnp.float32)

    # Forward #1: N=200 with 128-row tiles -> 2 grid steps, ragged last tile
    # (72 valid rows), domain 1.
    N1 = 200
    scales1 = jnp.linspace(0.05, 0.2, N1, dtype=jnp.float32)[:, None]
    x1 = jax.random.normal(k_x1, (N1, D), jnp.float32) * scales1

    out1 = boundary_loss_forward(x1, jnp.int32(1), delta, prototype, tile_rows=128)
    out1 = jax.block_until_ready(out1)
    loss1, pos1, neg1, proto1 = out1
    ref1 = _reference(x1, 1, delta, prototype)
    assert jnp.allclose(loss1, ref1[0], atol=1e-5, rtol=1e-5), (loss1, ref1[0])
    assert jnp.array_equal(pos1, ref1[1])
    assert jnp.array_equal(neg1, ref1[2])
    assert jnp.allclose(proto1, ref1[3], atol=1e-5, rtol=1e-5)

    # Forward #2: N=96 with the default tile size -> single (ragged) step,
    # same domain so the prototype row is now non-zero -> non-trivial momentum.
    N2 = 96
    scales2 = jnp.linspace(0.05, 0.2, N2, dtype=jnp.float32)[:, None]
    x2 = jax.random.normal(k_x2, (N2, D), jnp.float32) * scales2 + 0.02

    out2 = boundary_loss_forward(x2, jnp.int32(1), delta, proto1)
    out2 = jax.block_until_ready(out2)
    loss2, pos2, neg2, proto2 = out2
    ref2 = _reference(x2, 1, delta, proto1)
    assert jnp.allclose(loss2, ref2[0], atol=1e-5, rtol=1e-5), (loss2, ref2[0])
    assert jnp.array_equal(pos2, ref2[1])
    assert jnp.array_equal(neg2, ref2[2])
    assert jnp.allclose(proto2, ref2[3], atol=1e-5, rtol=1e-5)

    print("KERNEL_OK")
</pallas_src>

<mosaic_0001>
module attributes {stable_mosaic.version = 11 : i64} {
  func.func @_boundary_kernel(%arg0: i32, %arg1: memref<1xi32, #tpu.memory_space<smem>>, %arg2: memref<2xf32, #tpu.memory_space<smem>>, %arg3: memref<128x128xf32, #tpu.memory_space<vmem>>, %arg4: memref<2x128xf32, #tpu.memory_space<vmem>>, %arg5: memref<1x1xf32, #tpu.memory_space<vmem>>, %arg6: memref<2x128xf32, #tpu.memory_space<vmem>>, %arg7: memref<2x128xf32, #tpu.memory_space<vmem>>, %arg8: memref<1x128xf32, #tpu.memory_space<vmem>>, %arg9: memref<1x128xf32, #tpu.memory_space<vmem>>) attributes {dimension_semantics = [#tpu.dimension_semantics<arbitrary>], iteration_bounds = array<i64: 2>, scalar_prefetch = 0 : i64, scratch_operands = 2 : i64, tpu.core_type = #tpu.core_type<tc>, window_params = [{transform_indices = @transform_0, window_bounds = array<i64: 1>}, {transform_indices = @transform_1, window_bounds = array<i64: 2>}, {transform_indices = @transform_2, window_bounds = array<i64: 128, 128>}, {pipeline_mode = #tpu.pipeline_mode<synchronous>, transform_indices = @transform_3, window_bounds = array<i64: 2, 128>}, {pipeline_mode = #tpu.pipeline_mode<synchronous>, transform_indices = @transform_4, window_bounds = array<i64: 1, 1>}, {transform_indices = @transform_5, window_bounds = array<i64: 2, 128>}, {pipeline_mode = #tpu.pipeline_mode<synchronous>, transform_indices = @transform_6, window_bounds = array<i64: 2, 128>}]} {
    %c0_i32 = arith.constant 0 : i32
    %0 = arith.cmpi eq, %arg0, %c0_i32 : i32
    %1 = arith.extui %0 : i1 to i32
    %c0_i32_0 = arith.constant 0 : i32
    %2 = arith.cmpi ne, %1, %c0_i32_0 : i32
    scf.if %2 {
      %cst_28 = arith.constant 0.000000e+00 : f32
      %82 = vector.broadcast %cst_28 : f32 to vector<1x128xf32>
      %c0_29 = arith.constant 0 : index
      %c0_30 = arith.constant 0 : index
      %83 = vector.load %arg8[%c0_29, %c0_30] : memref<1x128xf32, #tpu.memory_space<vmem>>, vector<1x128xf32>
      tpu.vector_store %arg8[%c0_29, %c0_30], %82 {strides = array<i32>} : memref<1x128xf32, #tpu.memory_space<vmem>>, vector<1x128xf32>,
      %cst_31 = arith.constant 0.000000e+00 : f32
      %84 = vector.broadcast %cst_31 : f32 to vector<1x128xf32>
      %c0_32 = arith.constant 0 : index
      %c0_33 = arith.constant 0 : index
      %85 = vector.load %arg9[%c0_32, %c0_33] : memref<1x128xf32, #tpu.memory_space<vmem>>, vector<1x128xf32>
      tpu.vector_store %arg9[%c0_32, %c0_33], %84 {strides = array<i32>} : memref<1x128xf32, #tpu.memory_space<vmem>>, vector<1x128xf32>,
    } else {
    }
    %c0 = arith.constant 0 : index
    %3 = memref.load %arg1[%c0] : memref<1xi32, #tpu.memory_space<smem>>
    %c0_i32_1 = arith.constant 0 : i32
    %4 = arith.cmpi eq, %3, %c0_i32_1 : i32
    %c0_2 = arith.constant 0 : index
    %5 = memref.load %arg2[%c0_2] : memref<2xf32, #tpu.memory_space<smem>>
    %c1 = arith.constant 1 : index
    %6 = memref.load %arg2[%c1] : memref<2xf32, #tpu.memory_space<smem>>
    %7 = arith.select %4, %5, %6 : f32
    %cst = arith.constant 0.000000e+00 : f32
    %8 = vector.broadcast %cst : f32 to vector<1x1xf32>
    %9 = vector.broadcast %7 : f32 to vector<1x1xf32>
    %10 = arith.addf %9, %8 : vector<1x1xf32>
    %cst_3 = arith.constant 0.000000e+00 : f32
    %11 = vector.broadcast %cst_3 : f32 to vector<1x1xf32>
    %12 = arith.maximumf %10, %11 : vector<1x1xf32>
    %13 = math.absf %10 : vector<1x1xf32>
    %cst_4 = arith.constant 0.000000e+00 : f32
    %14 = vector.broadcast %cst_4 : f32 to vector<1x1xf32>
    %15 = arith.subf %14, %13 : vector<1x1xf32>
    %16 = math.exp %15 : vector<1x1xf32>
    %cst_5 = arith.constant 1.000000e+00 : f32
    %17 = vector.broadcast %cst_5 : f32 to vector<1x1xf32>
    %18 = arith.addf %17, %16 : vector<1x1xf32>
    %19 = math.log %18 : vector<1x1xf32>
    %20 = arith.addf %12, %19 : vector<1x1xf32>
    %c0_6 = arith.constant 0 : index
    %c0_7 = arith.constant 0 : index
    %21 = vector.load %arg4[%c0_6, %c0_7] : memref<2x128xf32, #tpu.memory_space<vmem>>, vector<2x128xf32>
    %22 = tpu.iota {dimensions = array<i32: 0>} : vector<2x1xi32>
    %23 = vector.broadcast %3 : i32 to vector<2x1xi32>
    %24 = arith.cmpi eq, %22, %23 : vector<2x1xi32>
    %cst_8 = arith.constant 0.000000e+00 : f32
    %25 = vector.shape_cast %24 : vector<2x1xi1> to vector<2x1xi1>
    %26 = vector.broadcast %25 : vector<2x1xi1> to vector<2x128xi1>
    %27 = vector.broadcast %cst_8 : f32 to vector<2x128xf32>
    %28 = arith.select %26, %21, %27 : vector<2x128xi1>, vector<2x128xf32>
    %cst_9 = arith.constant dense<0.000000e+00> : vector<128xf32>
    %29 = vector.multi_reduction <add>, %28, %cst_9 [0] : vector<2x128xf32> to vector<128xf32>
    %30 = vector.shape_cast %29 : vector<128xf32> to vector<1x128xf32>
    %c128_i32 = arith.constant 128 : i32
    %31 = arith.muli %arg0, %c128_i32 : i32
    %32 = tpu.iota {dimensions = array<i32: 0>} : vector<128x1xi32>
    %33 = vector.broadcast %31 : i32 to vector<128x1xi32>
    %34 = arith.addi %32, %33 : vector<128x1xi32>
    %35 = tpu.iota {dimensions = array<i32: 1>} : vector<1x128xi32>
    %36 = vector.broadcast %31 : i32 to vector<1x128xi32>
    %37 = arith.addi %35, %36 : vector<1x128xi32>
    %c200_i32 = arith.constant 200 : i32
    %38 = vector.broadcast %c200_i32 : i32 to vector<128x1xi32>
    %39 = arith.cmpi slt, %34, %38 : vector<128x1xi32>
    %c200_i32_10 = arith.constant 200 : i32
    %40 = vector.broadcast %c200_i32_10 : i32 to vector<1x128xi32>
    %41 = arith.cmpi slt, %37, %40 : vector<1x128xi32>
    %42 = arith.extui %41 : vector<1x128xi1> to vector<1x128xi32>
    %43 = arith.sitofp %42 : vector<1x128xi32> to vector<1x128xf32>
    %c0_11 = arith.constant 0 : index
    %c0_12 = arith.constant 0 : index
    %44 = vector.load %arg3[%c0_11, %c0_12] : memref<128x128xf32, #tpu.memory_space<vmem>>, vector<128x128xf32>
    %cst_13 = arith.constant 0.000000e+00 : f32
    %45 = vector.shape_cast %39 : vector<128x1xi1> to vector<128x1xi1>
    %46 = vector.broadcast %45 : vector<128x1xi1> to vector<128x128xi1>
    %47 = vector.broadcast %cst_13 : f32 to vector<128x128xf32>
    %48 = arith.select %46, %44, %47 : vector<128x128xi1>, vector<128x128xf32>
    %49 = vector.broadcast %30 : vector<1x128xf32> to vector<128x128xf32>
    %50 = arith.subf %48, %49 : vector<128x128xf32>
    %cst_14 = arith.constant 1.000000e+00 : f32
    %51 = vector.broadcast %cst_14 : f32 to vector<1x128xf32>
    %52 = arith.mulf %50, %50 : vector<128x128xf32>
    %cst_15 = arith.constant dense<0.000000e+00> : vector<1x128xf32>
    %53 = tpu.matmul %51, %52, %cst_15 {dimension_numbers = #tpu.dot_dimension_numbers<[1], [1], [0], [0], [0, 0, 1, 0], [], []>, precision = #tpu.contract_precision<fp32>} : vector<1x128xf32>, vector<128x128xf32>, vector<1x128xf32> -> vector<1x128xf32>
    %54 = math.sqrt %53 : vector<1x128xf32>
    %55 = vector.broadcast %20 : vector<1x1xf32> to vector<1x128xf32>
    %56 = arith.cmpf olt, %54, %55 : vector<1x128xf32>
    %57 = arith.extui %56 : vector<1x128xi1> to vector<1x128xi32>
    %58 = arith.sitofp %57 : vector<1x128xi32> to vector<1x128xf32>
    %59 = arith.mulf %58, %43 : vector<1x128xf32>
    %60 = vector.broadcast %20 : vector<1x1xf32> to vector<1x128xf32>
    %61 = arith.cmpf ogt, %54, %60 : vector<1x128xf32>
    %62 = arith.extui %61 : vector<1x128xi1> to vector<1x128xi32>
    %63 = arith.sitofp %62 : vector<1x128xi32> to vector<1x128xf32>
    %64 = arith.mulf %63, %43 : vector<1x128xf32>
    %65 = tpu.concatenate %59, %64 in 0 : vector<1x128xf32>, vector<1x128xf32> -> vector<2x128xf32>
    %c0_16 = arith.constant 0 : index
    %c0_17 = arith.constant 0 : index
    %66 = vector.load %arg6[%c0_16, %c0_17] : memref<2x128xf32, #tpu.memory_space<vmem>>, vector<2x128xf32>
    tpu.vector_store %arg6[%c0_16, %c0_17], %65 {strides = array<i32>} : memref<2x128xf32, #tpu.memory_space<vmem>>, vector<2x128xf32>,
    %c0_18 = arith.constant 0 : index
    %c0_19 = arith.constant 0 : index
    %67 = vector.load %arg8[%c0_18, %c0_19] : memref<1x128xf32, #tpu.memory_space<vmem>>, vector<1x128xf32>
    %68 = vector.broadcast %20 : vector<1x1xf32> to vector<1x128xf32>
    %69 = arith.subf %54, %68 : vector<1x128xf32>
    %70 = math.absf %69 : vector<1x128xf32>
    %71 = arith.addf %59, %64 : vector<1x128xf32>
    %72 = arith.mulf %70, %71 : vector<1x128xf32>
    %73 = arith.addf %67, %72 : vector<1x128xf32>
    %c0_20 = arith.constant 0 : index
    %c0_21 = arith.constant 0 : index
    %74 = vector.load %arg8[%c0_20, %c0_21] : memref<1x128xf32, #tpu.memory_space<vmem>>, vector<1x128xf32>
    tpu.vector_store %arg8[%c0_20, %c0_21], %73 {strides = array<i32>} : memref<1x128xf32, #tpu.memory_space<vmem>>, vector<1x128xf32>,
    %c0_22 = arith.constant 0 : index
    %c0_23 = arith.constant 0 : index
    %75 = vector.load %arg9[%c0_22, %c0_23] : memref<1x128xf32, #tpu.memory_space<vmem>>, vector<1x128xf32>
    %cst_24 = arith.constant dense<0.000000e+00> : vector<1x128xf32>
    %76 = tpu.matmul %43, %48, %cst_24 {dimension_numbers = #tpu.dot_dimension_numbers<[1], [0], [0], [1], [0, 0, 1, 1], [], []>, precision = #tpu.contract_precision<fp32>} : vector<1x128xf32>, vector<128x128xf32>, vector<1x128xf32> -> vector<1x128xf32>
    %77 = arith.addf %75, %76 : vector<1x128xf32>
    %c0_25 = arith.constant 0 : index
    %c0_26 = arith.constant 0 : index
    %78 = vector.load %arg9[%c0_25, %c0_26] : memref<1x128xf32, #tpu.memory_space<vmem>>, vector<1x128xf32>
    tpu.vector_store %arg9[%c0_25, %c0_26], %77 {strides = array<i32>} : memref<1x128xf32, #tpu.memory_space<vmem>>, vector<1x128xf32>,
    %c1_i32 = arith.constant 1 : i32
    %79 = arith.cmpi eq, %arg0, %c1_i32 : i32
    %80 = arith.extui %79 : i1 to i32
    %c0_i32_27 = arith.constant 0 : i32
    %81 = arith.cmpi ne, %80, %c0_i32_27 : i32
    scf.if %81 {
      %c0_28 = arith.constant 0 : index
      %c0_29 = arith.constant 0 : index
      %82 = vector.load %arg8[%c0_28, %c0_29] : memref<1x128xf32, #tpu.memory_space<vmem>>, vector<1x128xf32>
      %83 = vector.shape_cast %82 : vector<1x128xf32> to vector<1x1x128xf32>
      %cst_30 = arith.constant dense<0.000000e+00> : vector<1xf32>
      %84 = vector.multi_reduction <add>, %83, %cst_30 [1, 2] : vector<1x1x128xf32> to vector<1xf32>
      %85 = vector.shape_cast %84 : vector<1xf32> to vector<1x1x1xf32>
      %86 = vector.extract %85[0, 0, 0] : f32 from vector<1x1x1xf32>
      %87 = vector.broadcast %86 : f32 to vector<1x1xf32>
      %cst_31 = arith.constant 5.000000e-03 : f32
      %88 = vector.broadcast %cst_31 : f32 to vector<1x1xf32>
      %89 = arith.mulf %87, %88 : vector<1x1xf32>
      %c0_32 = arith.constant 0 : index
      %c0_33 = arith.constant 0 : index
      %90 = vector.load %arg5[%c0_32, %c0_33] : memref<1x1xf32, #tpu.memory_space<vmem>>, vector<1x1xf32>
      tpu.vector_store %arg5[%c0_32, %c0_33], %89 {strides = array<i32>} : memref<1x1xf32, #tpu.memory_space<vmem>>, vector<1x1xf32>,
      %c0_34 = arith.constant 0 : index
      %c0_35 = arith.constant 0 : index
      %91 = vector.load %arg9[%c0_34, %c0_35] : memref<1x128xf32, #tpu.memory_space<vmem>>, vector<1x128xf32>
      %cst_36 = arith.constant 5.000000e-03 : f32
      %92 = vector.broadcast %cst_36 : f32 to vector<1x128xf32>
      %93 = arith.mulf %91, %92 : vector<1x128xf32>
      %94 = arith.mulf %93, %30 : vector<1x128xf32>
      %95 = vector.shape_cast %94 : vector<1x128xf32> to vector<1x1x128xf32>
      %cst_37 = arith.constant dense<0.000000e+00> : vector<1xf32>
      %96 = vector.multi_reduction <add>, %95, %cst_37 [1, 2] : vector<1x1x128xf32> to vector<1xf32>
      %97 = vector.shape_cast %96 : vector<1xf32> to vector<1x1x1xf32>
      %98 = vector.extract %97[0, 0, 0] : f32 from vector<1x1x1xf32>
      %99 = arith.mulf %93, %93 : vector<1x128xf32>
      %100 = vector.shape_cast %99 : vector<1x128xf32> to vector<1x1x128xf32>
      %cst_38 = arith.constant dense<0.000000e+00> : vector<1xf32>
      %101 = vector.multi_reduction <add>, %100, %cst_38 [1, 2] : vector<1x1x128xf32> to vector<1xf32>
      %102 = vector.shape_cast %101 : vector<1xf32> to vector<1x1x1xf32>
      %103 = vector.extract %102[0, 0, 0] : f32 from vector<1x1x1xf32>
      %104 = math.sqrt %103 : f32
      %cst_39 = arith.constant 9.99999993E-9 : f32
      %105 = arith.maximumf %104, %cst_39 : f32
      %106 = arith.mulf %30, %30 : vector<1x128xf32>
      %107 = vector.shape_cast %106 : vector<1x128xf32> to vector<1x1x128xf32>
      %cst_40 = arith.constant dense<0.000000e+00> : vector<1xf32>
      %108 = vector.multi_reduction <add>, %107, %cst_40 [1, 2] : vector<1x1x128xf32> to vector<1xf32>
      %109 = vector.shape_cast %108 : vector<1xf32> to vector<1x1x1xf32>
      %110 = vector.extract %109[0, 0, 0] : f32 from vector<1x1x1xf32>
      %111 = math.sqrt %110 : f32
      %cst_41 = arith.constant 9.99999993E-9 : f32
      %112 = arith.maximumf %111, %cst_41 : f32
      %113 = arith.mulf %105, %112 : f32
      %114 = arith.divf %98, %113 : f32
      %115 = vector.broadcast %114 : f32 to vector<1x128xf32>
      %116 = arith.mulf %30, %115 : vector<1x128xf32>
      %cst_42 = arith.constant 1.000000e+00 : f32
      %117 = arith.subf %cst_42, %114 : f32
      %118 = vector.broadcast %117 : f32 to vector<1x128xf32>
      %119 = arith.mulf %93, %118 : vector<1x128xf32>
      %120 = arith.addf %116, %119 : vector<1x128xf32>
      %121 = vector.shape_cast %24 : vector<2x1xi1> to vector<2x1xi1>
      %122 = vector.broadcast %121 : vector<2x1xi1> to vector<2x128xi1>
      %123 = vector.shape_cast %120 : vector<1x128xf32> to vector<1x128xf32>
      %124 = vector.broadcast %123 : vector<1x128xf32> to vector<2x128xf32>
      %125 = arith.select %122, %124, %21 : vector<2x128xi1>, vector<2x128xf32>
      %c0_43 = arith.constant 0 : index
      %c0_44 = arith.constant 0 : index
      %126 = vector.load %arg7[%c0_43, %c0_44] : memref<2x128xf32, #tpu.memory_space<vmem>>, vector<2x128xf32>
      tpu.vector_store %arg7[%c0_43, %c0_44], %125 {strides = array<i32>} : memref<2x128xf32, #tpu.memory_space<vmem>>, vector<2x128xf32>,
    } else {
    }
    return
  }
  func.func @transform_0(%arg0: i32) -> i32 {
    %c0_i32 = arith.constant 0 : i32
    %c0_i32_0 = arith.constant 0 : i32
    return %c0_i32 : i32
  }
  func.func @transform_1(%arg0: i32) -> i32 {
    %c0_i32 = arith.constant 0 : i32
    %c0_i32_0 = arith.constant 0 : i32
    return %c0_i32 : i32
  }
  func.func @transform_2(%arg0: i32) -> (i32, i32) {
    %c0_i32 = arith.constant 0 : i32
    %c0_i32_0 = arith.constant 0 : i32
    return %arg0, %c0_i32 : i32, i32
  }
  func.func @transform_3(%arg0: i32) -> (i32, i32) {
    %c0_i32 = arith.constant 0 : i32
    %c0_i32_0 = arith.constant 0 : i32
    %c0_i32_1 = arith.constant 0 : i32
    return %c0_i32, %c0_i32_0 : i32, i32
  }
  func.func @transform_4(%arg0: i32) -> (i32, i32) {
    %c0_i32 = arith.constant 0 : i32
    %c0_i32_0 = arith.constant 0 : i32
    %c0_i32_1 = arith.constant 0 : i32
    return %c0_i32, %c0_i32_0 : i32, i32
  }
  func.func @transform_5(%arg0: i32) -> (i32, i32) {
    %c0_i32 = arith.constant 0 : i32
    %c0_i32_0 = arith.constant 0 : i32
    return %c0_i32, %arg0 : i32, i32
  }
  func.func @transform_6(%arg0: i32) -> (i32, i32) {
    %c0_i32 = arith.constant 0 : i32
    %c0_i32_0 = arith.constant 0 : i32
    %c0_i32_1 = arith.constant 0 : i32
    return %c0_i32, %c0_i32_0 : i32, i32
  }
}

</mosaic_0001>

<bundles_post_ra>
// kernel: boundary_loss_forward.1
= control target key start
LH: loop header
LB: loop body
LE: loop exit
PB: predicated region body
PF: predicated region fallthrough
CT: control target
= control target key end

     0   :  { %s4353_s0 = inlined_call_operand.<no memory space> [shape: s32[1], index: 0, kind: input, shape index: {}]   ;;  %s4354_s1 = inlined_call_operand.vmem [shape: f32[2], index: 1, kind: input, shape index: {}]   ;;  %s4355_s2 = inlined_call_operand.hbm [shape: f32[200,128], index: 2, kind: input, shape index: {}]   ;;  %s4356_s3 = inlined_call_operand.vmem [shape: f32[2,128], index: 3, kind: input, shape index: {}]   ;;  %s4357_s4 = inlined_call_operand.hbm [shape: f32[1,1], index: 4, kind: output, shape index: {0}]   ;;  %s4358_s5 = inlined_call_operand.vmem [shape: f32[2,200], index: 5, kind: output, shape index: {1}]   ;;  %s4359_s6 = inlined_call_operand.hbm [shape: f32[2,128], index: 6, kind: output, shape index: {2}]  }
   0x1   :  { %12 = sst [smem:[#allocation4]] %s4353_s0 }
   0x2   :  { %13 = vsyncpa [#allocation8], 0 }
   0x3   :  { %14 = vsyncpa [#allocation6], 0 }
   0x4   :  { %16 = vsyncpa [#allocation6 + $0x1], 0 }
   0x5   :  { %17 = vsyncpa [#allocation7], 0 }
   0x6   :  { %18 = vsyncpa [#allocation12], 0  ;;  %s3234_s23 = smov 0   ;;  %s3236_s24 = smov 0  }
   0x7   :  { %s3238_s25 = smov 0   ;;  %s3240_s26 = smov 0  }
   0x8 LB: > { %s3253_s0 = sadd.s32 4294967295, %s3182_s26   ;;  %s3256_s27 = sadd.s32 1, %s3182_s26   ;;  %s3182_s26 = sphi %s3240_s26, %s4571_s26   ;;  %s3178_s25 = sphi %s3238_s25, %s4570_s25   ;;  %s3174_s24 = sphi %s3236_s24, %s4569_s24   ;;  %s3170_s23 = sphi %s3234_s23, %s4568_s23  }
   0x9   : > { %s70_s28 = ssub.s32 %s3182_s26, %s3256_s27  ;;  %s73_s29 = sadd.s32 1, %s3178_s25 }
   0xa   : > { %p71_p0 = scmp.eq.s32.totalorder %s70_s28, 0  ;;  %p80_p1 = scmp.ne.s32.totalorder %s3178_s25, %s3174_s24 }
   0xb   : > { %p81_p2 = scmp.eq.s32.totalorder %s3182_s26, 0  ;;  %p86_p3 = scmp.ne.s32.totalorder %s3174_s24, %s3170_s23 }
   0xc   : > { %s3266_s30 = scalar_select %p71_p0, %s3178_s25, %s73_s29  }
   0xd   : > { %p3268_p4 = por %p81_p2, %p80_p1  ;;  %p87_p5 = scmp.eq.s32.totalorder %s3253_s0, 0 }
   0xe   : > { %p1997_p6 = scmp.ge.s32.totalorder %s3182_s26, 1  ;;  %p186_p7 = scmp.lt.s32.totalorder %s3182_s26, 3 }
   0xf   : > { %p3277_p8 = por %p87_p5, %p86_p3  ;;  %s202_s12 = sshll.u32 %s4354_s1, 4  ;;  %s203_s12 = int_to_ptr.vmem [resolvable:$true] %s202_s12 }
  0x10   : > { %p3282_p10 = pnand %p1997_p6, %p186_p7  ;;  %s3041_s13 = scalar_lea.vmem %s203_s12, 16 }
  0x11   : > { %s4446_s8 = scalar_select %p3277_p8, 1, 0 }
  0x12   : > { %p2976_p11 = pneg %p3282_p10  ;;  %p3042_p13 = scmp.ne.s32.totalorder %s203_s12, %s3041_s13 }
  0x13   : > { %p3049_p3 = scmp.lt.s32.totalorder %s203_s12, %s203_s12  ;;  %p3050_p6 = scmp.lt.s32.totalorder %s3041_s13, %s3041_s13 }
  0x14   : > { %p2977_p12 = pnand %p2976_p11, %p87_p5 }
  0x15   : > { %p3051_p7 = por %p3050_p6, %p3049_p3 }
  0x16   : > { %p3043_p0 = pneg %p2977_p12 }
  0x18   : > { %p3044_p1 = pnand %p3043_p0, %p3042_p13 }
  0x1a   : > { %p3045_p2 = pneg %p3044_p1 }
  0x1c   : > { %p3052_p9 = pnand %p3051_p7, %p3045_p2 }
  0x1e   : > { %3055 = shalt.err (!%p3052_p9)
}
  0x1f   : > { %s3184_s14 = smov [#allocation5]   ;;  %p1999_p8 = scmp.ge.s32.totalorder %s3182_s26, 2 }
  0x20   : > { %2979 = dma.vmem_to_smem (!%p2977_p12), %s203_s12, 16, %s3184_s14, [#allocation8]  }
  0x21   : > { %212 = sbr.rel (%p1999_p8) target bundleno = 75 (0x4b), region = 28 }
  0x28   : > { %215 = sbr.rel (!%p3268_p4) target bundleno = 75 (0x4b), region = 32  ;;  %s216_s15 = sand.u32 (%p3268_p4), 1, %s3178_s25  }
  0x29   : > { %s2001_s16 = sshll.u32 (%p3268_p4), %s3182_s26, 4  ;;  %s2000_s17 = sshll.u32 (%p3268_p4), %s216_s15, 7 }
  0x2a   : > { %s222_s18 = ssub.s32 (%p3268_p4), 25, %s2001_s16  ;;  %s3301_s21 = scalar_lea.sflag (%p3268_p4), [#allocation6], %s216_s15 }
  0x2b   : > { %p223_p11 = scmp.lt.s32.totalorder (%p3268_p4), %s222_s18, 16  ;;  %s220_s22 = scalar_lea.vmem (%p3268_p4), [#allocation9], %s2000_s17 }
  0x2f   : > { %s4573_s18 = smov (!%p223_p11, %s222_s18), 16 }
  0x30   : > { %s3298_s19 = sshll.u32 %s4573_s18, 7 }
  0x31   : > { %s227_s20 = ssub.s32 2048, %s3298_s19 }
  0x32   : > { %228 = vsyncadd %s3301_s21, %s227_s20  ;;  %p2003_p4 = scmp.ne.s32.totalorder %s3298_s19, 0  ;;  %s2027_s23 = sshll.u32 %s3182_s26, 11 }
  0x33   : > { %s3309_s7 = scalar_lea.hbm %s4355_s2, %s2027_s23  ;;  %s233_s10 = sshll.u32 %s220_s22, 4  ;;  %s3311_s10 = int_to_ptr.vmem [resolvable:$true] %s233_s10 }
  0x34   : > { %s3056_s11 = scalar_lea.hbm %s3309_s7, %s3298_s19  ;;  %s3060_s26 = scalar_lea.hbm %s4355_s2, 3200 }
  0x35   : > { %p3057_p8 = scmp.ne.s32.totalorder %s3309_s7, %s3056_s11  ;;  %p3061_p13 = scmp.lt.u32.totalorder %s3309_s7, %s4355_s2 }
  0x36   : > { %p3062_p0 = scmp.lt.u32.totalorder %s3060_s26, %s3056_s11  ;;  %p3064_p2 = scmp.lt.u32.totalorder %s3056_s11, %s3309_s7 }
  0x37   : > { %p3058_p9 = pnand %p3057_p8, %p2003_p4 }
  0x38   : > { %p3063_p1 = por %p3062_p0, %p3061_p13 }
  0x39   : > { %p3059_p12 = pneg %p3058_p9 }
  0x3a   : > { %p3065_p3 = por %p3064_p2, %p3063_p1 }
  0x3c   : > { %p3066_p6 = pnand %p3065_p3, %p3059_p12 }
  0x3e   : > { %3069 = shalt.err (!%p3066_p6)
}
  0x3f   : > { %s3070_s16 = scalar_lea.vmem %s3311_s10, %s3298_s19  ;;  %s3185_s17 = smov [#allocation9]  }
  0x40   : > { %p3071_p7 = scmp.ne.s32.totalorder %s3311_s10, %s3070_s16  ;;  %s3074_s18 = sshll.u32 %s3185_s17, 4  ;;  %s3075_s18 = int_to_ptr.vmem [resolvable:$false] %s3074_s18 }
  0x41   : > { %s3076_s20 = scalar_lea.vmem %s3075_s18, 4096  ;;  %p3077_p9 = scmp.lt.s32.totalorder %s3311_s10, %s3075_s18 }
  0x42   : > { %p3072_p11 = pnand %p3071_p7, %p2003_p4  ;;  %p3078_p13 = scmp.lt.s32.totalorder %s3076_s20, %s3070_s16 }
  0x44   : > { %p3073_p8 = pneg %p3072_p11  ;;  %p3079_p0 = por %p3078_p13, %p3077_p9 }
  0x46   : > { %p3080_p1 = pnand %p3079_p0, %p3073_p8 }
  0x48   : > { %3083 = shalt.err (!%p3080_p1)
}
  0x49   : > { %s3186_s22 = smov 128   ;;  %s3187_s23 = smov 8  }
  0x4a   : > { %239 = dma.hbm_to_vmem [thread:$0]  (%p2003_p4), %s3309_s7, %s3298_s19, %s3311_s10, %s3301_s21, %s3186_s22, %s3186_s22, %s3187_s23  }
  0x4b PF: > { %245 = sbr.rel (%p3282_p10) target bundleno = 1172 (0x494), region = 36 }
  0x52   : > { %3153 = dma.done.wait (%p87_p5), [#allocation8], 16  }
  0x53   : > { %3155 = vsyncadd (%p87_p5), [#allocation8], 4294967280  ;;  %s251_s28 = sand.u32 1, %s3174_s24   ;;  %p4448_p12 = scmp.ne.s32.totalorder %s4446_s8, 0 }
  0x54   : > { %s2009_s29 = sshll.u32 %s251_s28, 7  ;;  %s252_s11 = scalar_lea.sflag [#allocation6], %s251_s28 }
  0x55   : > { %s3345_s12 = scalar_lea.vmem [#allocation9], %s2009_s29 }
  0x56   : > { %3157 = dma.done.wait (%p4448_p12), %s252_s11, 2048  }
  0x57   : > { %3159 = vsyncadd (%p4448_p12), %s252_s11, 4294965248 }
  0x58   : > { %260 = sfence }
  0x59   : > { %p289_p10 = scmp.lt.s32.totalorder %s3253_s0, 1  ;;  %p4449_p5 = scmp.ne.s32.totalorder %s3253_s0, 0 }
  0x5a   : > { %v3188_v0 = vmov (!%p4449_p5), 0.0  }
  0x5b   : > { %s290_s9 = scalar_select %p289_p10, %s3253_s0, 1 }
  0x5c   : > { %296 = sbr.rel (%p4449_p5) target bundleno = 99 (0x63), region = 48  ;;  %297 = vst [vmem:[#allocation2] sm:$0x1] (!%p4449_p5), %v3188_v0  ;;  %298 = vst [vmem:[#allocation3] sm:$0x1] (!%p4449_p5), %v3188_v0 }
  0x5d   : > { %s2010_s19 = sshll.u32 %s290_s9, 1 }
  0x5e   : > { %s3356_s10 = scalar_lea.vmem %s4358_s5, %s2010_s19 }
  0x63 PF: > { %s3360_s8 = sld [smem:[#allocation4]]  ;;  %v4369_v1 = vlaneseq  ;;  %v4374_v2 = vmov 0.0|0.0   ;;  %s2013_s13 = sshll.u32 %s3253_s0, 7  ;;  %vm3190_vm0 = vmmov 0   ;;  %v4367_v5 = vmov 0.0   ;;  %v386_v17 = vld [vmem:[%s3345_s12] sm:$0xff] }
  0x64   : > { %2652 = vmatprep.subr.bf16.mxu1 %v4374_v2  ;;  %2676 = vmatprep.subr.bf16.mxu0 %v4374_v2  ;;  %v3368_v4 = vstv %s2013_s13  ;;  %v3380_v8 = vld [vmem:[%s4356_s3] sm:$0x3]  ;;  %vm323_vm1 = vcmask 1041408   ;;  %v4452_v12 = vmov 0  ;;  %v387_v24 = vld [vmem:[%s3345_s12 + $0x8] sm:$0xff]  ;;  %v388_v32 = vld [vmem:[%s3345_s12 + $0x10] sm:$0xff] }
  0x65   : > { %v3366_v3 = vshrl.u32 %v4369_v1, 7  ;;  %2264 = vmatprep.mubr.msk.f32.mxu1 %vm3190_vm0, %v4367_v5  ;;  %2299 = vmatprep.mubr.msk.f32.mxu0 %vm3190_vm0, %v4367_v5  ;;  %4451 = vst [vmem:[#allocation18_spill] sm:$0xff] %v3380_v8  ;;  %v389_v38 = vld [vmem:[%s3345_s12 + $0x18] sm:$0xff]  ;;  %v390_v40 = vld [vmem:[%s3345_s12 + $0x20] sm:$0xff]  ;;  %v391_v47 = vld [vmem:[%s3345_s12 + $0x28] sm:$0xff]  ;;  %s301_s15 = sld [smem:[#allocation5]] }
  0x66   : > { %v392_v48 = vld [vmem:[%s3345_s12 + $0x30] sm:$0xff]  ;;  %v393_v49 = vld [vmem:[%s3345_s12 + $0x38] sm:$0xff]  ;;  %v394_v51 = vld [vmem:[%s3345_s12 + $0x40] sm:$0xff]  ;;  %s2012_s16 = sld [smem:[#allocation5 + $0x1]]  ;;  %p2020_p2 = scmp.ne.s32.totalorder %s3253_s0, 1 }
  0x67   : > { %4450 = vst [vmem:[#allocation17_spill] sm:$0xff] %v3366_v3  ;;  %v332_v6 = vadd.s32 8, %v3366_v3  ;;  %v348_v7 = vadd.s32 %v3368_v4, %v3366_v3  ;;  %v333_v9 = vadd.s32 16, %v3366_v3  ;;  %v334_v11 = vadd.s32 24, %v3366_v3  ;;  %v395_v52 = vld [vmem:[%s3345_s12 + $0x48] sm:$0xff]  ;;  %v396_v54 = vld [vmem:[%s3345_s12 + $0x50] sm:$0xff] }
  0x68   : > { %v335_v14 = vadd.s32 32, %v3366_v3  ;;  %v336_v15 = vadd.s32 40, %v3366_v3  ;;  %v337_v20 = vadd.s32 48, %v3366_v3  ;;  %v338_v21 = vadd.s32 56, %v3366_v3  ;;  %v397_v55 = vld [vmem:[%s3345_s12 + $0x58] sm:$0xff] }
  0x69   : > { %v318_v10 = vstv %s3360_s8  ;;  %v349_v13 = vadd.s32 %v3368_v4, %v332_v6  ;;  %vm367_vm3 = vcmp.lt.s32.totalorder %v348_v7, 200  ;;  %v350_v19 = vadd.s32 %v3368_v4, %v333_v9  ;;  %p300_p4 = scmp.eq.s32.totalorder %s3360_s8, 0  ;;  %s3193_s29 = smov (!%p2020_p2), 1e-08  }
  0x6a   : > { %vm3386_vm2 = vcmp.eq.s32.totalorder %v3366_v3, %v318_v10  ;;  %v351_v23 = vadd.s32 %v3368_v4, %v334_v11  ;;  %v3402_v25 = vsel %vm367_vm3, %v386_v17, 0.0  ;;  %v352_v26 = vadd.s32 %v3368_v4, %v335_v14 }
  0x6b   : > { %v4453_v12 = vsel %vm3386_vm2, 4294967295, %v4452_v12  ;;  %v322_v16 = vsel %vm3386_vm2, %v3380_v8, 0.0  ;;  %vm368_vm4 = vcmp.lt.s32.totalorder %v349_v13, 200  ;;  %v353_v27 = vadd.s32 %v3368_v4, %v336_v15 }
  0x6c   : > { %4454 = vst [vmem:[#allocation19_spill] sm:$0xff] %v4453_v12  ;;  %v324_v18 = vsel %vm323_vm1, %v322_v16, 0.0  ;;  %v339_v29 = vadd.s32 64, %v3366_v3  ;;  %v340_v30 = vadd.s32 72, %v3366_v3  ;;  %v341_v31 = vadd.s32 80, %v3366_v3  ;;  %s4575_s15 = smov (!%p300_p4, %s301_s15), %s2012_s16 }
  0x6d   : > { %v325_v22 = vrot.slane %v324_v18, 4  ;;  %vm369_vm5 = vcmp.lt.s32.totalorder %v350_v19, 200  ;;  %v354_v33 = vadd.s32 %v3368_v4, %v337_v20  ;;  %v355_v34 = vadd.s32 %v3368_v4, %v338_v21 }
  0x6e   : > { %v342_v35 = vadd.s32 88, %v3366_v3  ;;  %v3413_v37 = vsel %vm368_vm4, %v387_v24, 0.0  ;;  %vm370_vm6 = vcmp.lt.s32.totalorder %v351_v23, 200  ;;  %v356_v39 = vadd.s32 %v3368_v4, %v339_v29 }
  0x6f   : > { %v326_v28 = vadd.f32 %v325_v22, %v324_v18  ;;  %v357_v41 = vadd.s32 %v3368_v4, %v340_v30  ;;  %v358_v42 = vadd.s32 %v3368_v4, %v341_v31  ;;  %v343_v44 = vadd.s32 96, %v3366_v3 }
  0x70   : > { %v359_v43 = vadd.s32 %v3368_v4, %v342_v35  ;;  %v3423_v46 = vsel %vm369_vm5, %v388_v32, 0.0  ;;  %vm371_vm7 = vcmp.lt.s32.totalorder %v352_v26, 200  ;;  %vm372_vm8 = vcmp.lt.s32.totalorder %v353_v27, 200  ;;  %v398_v26 = vld [vmem:[%s3345_s12 + $0x60] sm:$0xff] }
  0x71   : > { %v327_v36 = vrot.slane %v326_v28, 2  ;;  %v3428_v50 = vsel %vm370_vm6, %v389_v38, 0.0  ;;  %vm373_vm9 = vcmp.lt.s32.totalorder %v354_v33, 200  ;;  %vm374_vm10 = vcmp.lt.s32.totalorder %v355_v34, 200 }
  0x72   : > { %vm375_vm11 = vcmp.lt.s32.totalorder %v356_v39, 200  ;;  %vm376_vm12 = vcmp.lt.s32.totalorder %v357_v41, 200  ;;  %vm377_vm13 = vcmp.lt.s32.totalorder %v358_v42, 200  ;;  %vm378_vm14 = vcmp.lt.s32.totalorder %v359_v43, 200 }
  0x73   : > { %v328_v45 = vadd.f32 %v327_v36, %v326_v28  ;;  %v3435_v56 = vsel %vm371_vm7, %v390_v40, 0.0  ;;  %v3438_v57 = vsel %vm372_vm8, %v391_v47, 0.0  ;;  %v344_v58 = vadd.s32 104, %v3366_v3 }
  0x74   : > { %v360_v59 = vadd.s32 %v3368_v4, %v343_v44  ;;  %v3445_v61 = vsel %vm373_vm9, %v392_v48, 0.0  ;;  %v3448_v62 = vsel %vm374_vm10, %v393_v49, 0.0  ;;  %v345_v63 = vadd.s32 112, %v3366_v3 }
  0x75   : > { %v329_v53 = vrot.slane %v328_v45, 1  ;;  %v3452_v0 = vsel %vm375_vm11, %v394_v51, 0.0  ;;  %v3454_v6 = vsel %vm376_vm12, %v395_v52, 0.0  ;;  %v3456_v7 = vsel %vm377_vm13, %v396_v54, 0.0 }
  0x76   : > { %v3458_v9 = vsel %vm378_vm14, %v397_v55, 0.0  ;;  %v3473_v17 = vadd.s32 %v3368_v4, %v344_v58  ;;  %vm379_vm15 = vcmp.lt.s32.totalorder %v360_v59, 200  ;;  %v346_v27 = vadd.s32 120, %v3366_v3 }
  0x77   : > { %v3442_v60 = vadd.f32 %v329_v53, %v328_v45  ;;  %v3488_v35 = vadd.s32 %v3368_v4, %v345_v63  ;;  %v3497_v40 = vsel %vm379_vm15, %v398_v26, 0.0  ;;  %v4382_v49 = vand.u32 4294901760, %v3402_v25 }
  0x78   : > { %vm380_vm1 = vcmp.lt.s32.totalorder %v3473_v17, 200  ;;  %v4467_v8 = vand.u32 4294901760, %v3423_v46  ;;  %vm1128_vm9 = vcmask 1040384   ;;  %vm1799_vm10 = vcmask (!%p2020_p2), 0  }
  0x79   : > { %4455 = vst [vmem:[#allocation20_spill] sm:$0xff] %v3442_v60  ;;  %v450_v10 = vsub.f32 %v3402_v25, %v3442_v60  ;;  %v451_v11 = vsub.f32 %v3413_v37, %v3442_v60  ;;  %v452_v13 = vsub.f32 %v3423_v46, %v3442_v60  ;;  %v453_v14 = vsub.f32 %v3428_v50, %v3442_v60 }
  0x7a   : > { %v454_v15 = vsub.f32 %v3435_v56, %v3442_v60  ;;  %v455_v16 = vsub.f32 %v3438_v57, %v3442_v60  ;;  %v456_v24 = vsub.f32 %v3445_v61, %v3442_v60  ;;  %v457_v34 = vsub.f32 %v3448_v62, %v3442_v60 }
  0x7b   : > { %v466_v18 = vmul.f32 %v450_v10, %v450_v10  ;;  %v467_v19 = vmul.f32 %v451_v11, %v451_v11  ;;  %v468_v20 = vmul.f32 %v452_v13, %v452_v13  ;;  %v469_v21 = vmul.f32 %v453_v14, %v453_v14 }
  0x7c   : > { %v3475_v22 = vmul.f32 %v454_v15, %v454_v15  ;;  %v3477_v23 = vmul.f32 %v455_v16, %v455_v16  ;;  %v3506_v44 = vmul.f32 %v456_v24, %v456_v24  ;;  %v473_v53 = vmul.f32 %v457_v34, %v457_v34 }
  0x7d   : > { %v483_v28 = vand.u32 4294901760, %v466_v18  ;;  %v486_v29 = vand.u32 4294901760, %v467_v19  ;;  %v489_v30 = vand.u32 4294901760, %v468_v20  ;;  %v492_v31 = vand.u32 4294901760, %v469_v21 }
  0x7e   : > { %v495_v32 = vand.u32 4294901760, %v3475_v22  ;;  %v498_v33 = vand.u32 4294901760, %v3477_v23  ;;  %v501_v10 = vand.u32 4294901760, %v3506_v44  ;;  %v458_v11 = vsub.f32 %v3452_v0, %v3442_v60 }
  0x7f   : > { %v3490_v36 = vpack.c.bf16 %v486_v29, %v483_v28  ;;  %v3492_v38 = vsub.f32 %v466_v18, %v483_v28  ;;  %v3494_v39 = vsub.f32 %v467_v19, %v486_v29  ;;  %v3499_v41 = vsub.f32 %v468_v20, %v489_v30 }
  0x80   : > { %v3501_v42 = vsub.f32 %v469_v21, %v492_v31  ;;  %v3504_v43 = vsub.f32 %v3475_v22, %v495_v32  ;;  %v3512_v48 = vsub.f32 %v3477_v23, %v498_v33  ;;  %v3527_v63 = vpack.c.bf16 %v492_v31, %v489_v30  ;;  %v399_v23 = vld [vmem:[%s3345_s12 + $0x68] sm:$0xff] }
  0x81   : > { %4456 = vst [vmem:[#allocation21_spill] sm:$0xff] %v3490_v36  ;;  %4457 = vst [vmem:[#allocation22_spill] sm:$0xff] %v3492_v38  ;;  %2654 = vmatpush3.bf16.xpose.msra.mxu1 %v3490_v36  ;;  %v4366_v45 = vand.u32 4294901760, %v3492_v38  ;;  %v4365_v47 = vand.u32 4294901760, %v3494_v39  ;;  %v4364_v51 = vand.u32 4294901760, %v3499_v41  ;;  %v459_v13 = vsub.f32 %v3454_v6, %v3442_v60 }
  0x82   : > { %4458 = vst [vmem:[#allocation23_spill] sm:$0xff] %v3494_v39  ;;  %2655 = vmatprep.subr.bf16.mxu1 %v4374_v2  ;;  %v4363_v52 = vand.u32 4294901760, %v3501_v42  ;;  %v4362_v58 = vand.u32 4294901760, %v3504_v43  ;;  %v4361_v59 = vand.u32 4294901760, %v3512_v48  ;;  %4459 = vst [vmem:[#allocation24_spill] sm:$0xff] %v3527_v63  ;;  %v504_v19 = vand.u32 4294901760, %v473_v53 }
  0x83   : > { %v572_v54 = vsub.f32 %v3492_v38, %v4366_v45  ;;  %v579_v55 = vsub.f32 %v3494_v39, %v4365_v47  ;;  %v586_v16 = vsub.f32 %v3499_v41, %v4364_v51  ;;  %v3543_v21 = vmul.f32 %v458_v11, %v458_v11 }
  0x84   : > { %v593_v18 = vsub.f32 %v3501_v42, %v4363_v52  ;;  %v600_v20 = vsub.f32 %v3504_v43, %v4362_v58  ;;  %v3545_v22 = vmul.f32 %v459_v13, %v459_v13  ;;  %v607_v26 = vsub.f32 %v3512_v48, %v4361_v59 }
  0x85   : > { %v573_v14 = vand.u32 4294901760, %v572_v54  ;;  %v580_v15 = vand.u32 4294901760, %v579_v55  ;;  %v363_v28 = vadd.s32 %v3368_v4, %v346_v27  ;;  %v4381_v29 = vand.u32 4294901760, %v3413_v37 }
  0x86   : > { %v3554_v30 = vsub.f32 %v3506_v44, %v501_v10  ;;  %v4371_v31 = vand.u32 4294901760, %v3543_v21  ;;  %v4370_v34 = vand.u32 4294901760, %v3545_v22  ;;  %vm381_vm3 = vcmp.lt.s32.totalorder %v3488_v35, 200 }
  0x87   : > { %v2677_v24 = vpack.c.bf16 %v580_v15, %v573_v14  ;;  %v587_v54 = vand.u32 4294901760, %v586_v16  ;;  %v594_v55 = vand.u32 4294901760, %v593_v18  ;;  %v460_v27 = vsub.f32 %v3456_v7, %v3442_v60 }
  0x88   : > { %4460 = vst [vmem:[#allocation25_spill] sm:$0xff] %v3554_v30  ;;  %v3564_v11 = vsel %vm380_vm1, %v399_v23, 0.0  ;;  %v3568_v44 = vpack.c.bf16 %v498_v33, %v495_v32  ;;  %v3570_v13 = vsub.f32 %v473_v53, %v504_v19  ;;  %v601_v14 = vand.u32 4294901760, %v600_v20 }
  0x89   : > { %2657 = vmatpush3.bf16.xpose.msra.mxu1 %v3527_v63  ;;  %2678 = vmatpush3.bf16.xpose.msra.mxu0 %v2677_v24  ;;  %v608_v16 = vand.u32 4294901760, %v607_v26  ;;  %v3576_v18 = vsub.f32 %v3543_v21, %v4371_v31  ;;  %v461_v17 = vsub.f32 %v3458_v9, %v3442_v60  ;;  %v3580_v23 = vmul.f32 %v460_v27, %v460_v27  ;;  %v400_v24 = vld [vmem:[%s3345_s12 + $0x70] sm:$0xff]  ;;  %v401_v27 = vld [vmem:[%s3345_s12 + $0x78] sm:$0xff] }
  0x8a   : > { %2658 = vmatprep.subr.bf16.mxu1 %v4374_v2  ;;  %2679 = vmatprep.subr.bf16.mxu0 %v4374_v2  ;;  %4461 = vst [vmem:[#allocation26_spill] sm:$0xff] %v3568_v44  ;;  %v3586_v32 = vsub.f32 %v3545_v22, %v4370_v34  ;;  %v4372_v33 = vand.u32 4294901760, %v3554_v30  ;;  %v462_v53 = vsub.f32 %v3497_v40, %v3442_v60  ;;  %vm382_vm4 = vcmp.lt.s32.totalorder %v363_v28, 200 }
  0x8b   : > { %4462 = vst [vmem:[#allocation27_spill] sm:$0xff] %v3576_v18  ;;  %v463_v20 = vsub.f32 %v3564_v11, %v3442_v60  ;;  %v2680_v26 = vpack.c.bf16 %v594_v55, %v587_v54  ;;  %v477_v59 = vmul.f32 %v461_v17, %v461_v17  ;;  %v513_v58 = vand.u32 4294901760, %v3580_v23 }
  0x8c   : > { %4463 = vst [vmem:[#allocation28_spill] sm:$0xff] %v3586_v32  ;;  %v4373_v52 = vand.u32 4294901760, %v3570_v13  ;;  %v478_v51 = vmul.f32 %v462_v53, %v462_v53  ;;  %v3598_v45 = vsel %vm381_vm3, %v400_v24, 0.0  ;;  %v3600_v5 = vpack.c.bf16 %v504_v19, %v501_v10 }
  0x8d   : > { %v479_v47 = vmul.f32 %v463_v20, %v463_v20  ;;  %v516_v1 = vand.u32 4294901760, %v477_v59  ;;  %v3603_v34 = vsub.f32 %v3580_v23, %v513_v58  ;;  %v4376_v54 = vand.u32 4294901760, %v3576_v18 }
  0x8e   : > { %4464 = vst [vmem:[#allocation29_spill] sm:$0xff] %v3600_v5  ;;  %v4377_v55 = vand.u32 4294901760, %v3586_v32  ;;  %v519_v28 = vand.u32 4294901760, %v478_v51  ;;  %v3607_v31 = vsel %vm382_vm4, %v401_v27, 0.0  ;;  %v2683_v35 = vpack.c.bf16 %v608_v16, %v601_v14 }
  0x8f   : > { %4465 = vst [vmem:[#allocation30_spill] sm:$0xff] %v3603_v34  ;;  %v522_v17 = vand.u32 4294901760, %v479_v47  ;;  %v3610_v24 = vsub.f32 %v477_v59, %v516_v1  ;;  %v4385_v10 = vand.u32 4294901760, %v3603_v34  ;;  %v464_v19 = vsub.f32 %v3598_v45, %v3442_v60 }
  0x90   : > { %v614_v23 = vsub.f32 %v3554_v30, %v4372_v33  ;;  %v621_v53 = vsub.f32 %v3570_v13, %v4373_v52  ;;  %v3623_v14 = vsub.f32 %v478_v51, %v519_v28  ;;  %v1149_v59 = vand.u32 4294901760, %v3428_v50 }
  0x91   : > { %2660 = vmatpush3.bf16.xpose.msra.mxu1 %v3568_v44  ;;  %2681 = vmatpush3.bf16.xpose.msra.mxu0 %v2680_v26  ;;  %v628_v16 = vsub.f32 %v3576_v18, %v4376_v54  ;;  %v3629_v20 = vsub.f32 %v479_v47, %v522_v17  ;;  %v4386_v26 = vand.u32 4294901760, %v3610_v24  ;;  %v465_v27 = vsub.f32 %v3607_v31, %v3442_v60 }
  0x92   : > { %2661 = vmatprep.subr.bf16.mxu1 %v4374_v2  ;;  %2682 = vmatprep.subr.bf16.mxu0 %v4374_v2  ;;  %4466 = vst [vmem:[#allocation31_spill] sm:$0xff] %v3623_v14  ;;  %v635_v33 = vsub.f32 %v3586_v32, %v4377_v55  ;;  %v480_v52 = vmul.f32 %v464_v19, %v464_v19  ;;  %v615_v19 = vand.u32 4294901760, %v614_v23  ;;  %v622_v12 = vand.u32 4294901760, %v621_v53 }
  0x93   : > { %v3642_v2 = vpack.c.bf16 %v4381_v29, %v4382_v49  ;;  %v642_v47 = vsub.f32 %v3603_v34, %v4385_v10  ;;  %v649_v54 = vsub.f32 %v3610_v24, %v4386_v26  ;;  %v481_v15 = vmul.f32 %v465_v27, %v465_v27 }
  0x94   : > { %v4391_v55 = vand.u32 4294901760, %v3629_v20  ;;  %v525_v51 = vand.u32 4294901760, %v480_v52  ;;  %v3653_v3 = vpack.c.bf16 %v1149_v59, %v4467_v8  ;;  %v4468_v49 = vand.u32 4294901760, %v3623_v14 }
  0x95   : > { %v528_v29 = vand.u32 4294901760, %v481_v15  ;;  %v629_v26 = vand.u32 4294901760, %v628_v16  ;;  %v636_v27 = vand.u32 4294901760, %v635_v33  ;;  %v643_v8 = vand.u32 4294901760, %v642_v47 }
  0x96   : > { %v656_v60 = vsub.f32 %v3623_v14, %v4468_v49  ;;  %v663_v10 = vsub.f32 %v3629_v20, %v4391_v55  ;;  %v3661_v44 = vsub.f32 %v480_v52, %v525_v51  ;;  %v650_v53 = vand.u32 4294901760, %v649_v54 }
  0x97   : > { %v4469_v63 = vmov 0.0|0.0   ;;  %v4470_v49 = vand.u32 4294901760, %v3543_v21  ;;  %v4471_v55 = vand.u32 4294901760, %v3545_v22  ;;  %v2686_v52 = vpack.c.bf16 %v622_v12, %v615_v19 }
  0x98   : > { %v3674_v33 = vpack.c.bf16 %v516_v1, %v513_v58  ;;  %v4474_v36 = vlaneseq  ;;  %v3677_v38 = vsub.f32 %v481_v15, %v528_v29  ;;  %v664_v47 = vand.u32 4294901760, %v663_v10 }
  0x99   : > { %2663 = vmatpush3.bf16.xpose.msra.mxu1 %v3600_v5  ;;  %2684 = vmatpush3.bf16.xpose.msra.mxu0 %v2683_v35  ;;  %v3672_v16 = vpack.c.bf16 %v4471_v55, %v4470_v49  ;;  %v657_v35 = vand.u32 4294901760, %v656_v60  ;;  %v2689_v5 = vpack.c.bf16 %v636_v27, %v629_v26  ;;  %v3681_v39 = vpack.c.bf16 %v522_v17, %v519_v28 }
  0x9a   : > { %2664 = vmatprep.subr.bf16.mxu1 %v4469_v63  ;;  %2685 = vmatprep.subr.bf16.mxu0 %v4469_v63  ;;  %4473 = vst [vmem:[#allocation33_spill] sm:$0xff] %v3674_v33  ;;  %v365_v23 = vand.u32 127, %v4474_v36  ;;  %v4400_v21 = vand.u32 4294901760, %v3661_v44  ;;  %v4476_v22 = vand.u32 4294901760, %v3402_v25  ;;  %v3689_v1 = vpack.c.bf16 %v650_v53, %v643_v8 }
  0x9b   : > { %4472 = vst [vmem:[#allocation32_spill] sm:$0xff] %v3672_v16  ;;  %4475 = vst [vmem:[#allocation34_spill] sm:$0xff] %v3681_v39  ;;  %v4477_v36 = vand.u32 4294901760, %v3413_v37  ;;  %v4478_v58 = vand.u32 4294901760, %v3423_v46  ;;  %v3702_v55 = vsub.f32 %v3428_v50, %v1149_v59  ;;  %v3704_v28 = vpack.c.bf16 %v528_v29, %v525_v51 }
  0x9c   : > { %v3687_v12 = vsub.f32 %v3402_v25, %v4476_v22  ;;  %v4409_v25 = vand.u32 4294901760, %v3435_v56  ;;  %v4408_v17 = vand.u32 4294901760, %v3438_v57  ;;  %v4406_v10 = vand.u32 4294901760, %v3445_v61 }
  0x9d   : > { %v3694_v60 = vsub.f32 %v3413_v37, %v4477_v36  ;;  %v3699_v15 = vsub.f32 %v3423_v46, %v4478_v58  ;;  %v3709_v26 = vpack.c.bf16 %v664_v47, %v657_v35  ;;  %v4403_v19 = vand.u32 4294901760, %v3448_v62 }
  0x9e   : > { %v3718_v50 = vsub.f32 %v3661_v44, %v4400_v21  ;;  %v3723_v29 = vsub.f32 %v3435_v56, %v4409_v25  ;;  %v3728_v59 = vsub.f32 %v3438_v57, %v4408_v17  ;;  %v3733_v51 = vsub.f32 %v3445_v61, %v4406_v10 }
  0x9f   : > { %v3739_v27 = vsub.f32 %v3448_v62, %v4403_v19  ;;  %v4401_v8 = vand.u32 4294901760, %v3452_v0  ;;  %v4402_v53 = vand.u32 4294901760, %v3454_v6  ;;  %v4407_v49 = vand.u32 4294901760, %v3456_v7 }
  0xa0   : > { %v4411_v35 = vand.u32 4294901760, %v3458_v9  ;;  %v4404_v47 = vand.u32 4294901760, %v3598_v45  ;;  %v3758_v21 = vadd.s32 %v365_v23, %v3368_v4  ;;  %v4410_v46 = vand.u32 4294901760, %v3687_v12 }
  0xa1   : > { %2666 = vmatpush3.bf16.xpose.msra.mxu1 %v3672_v16  ;;  %2687 = vmatpush3.bf16.xpose.msra.mxu0 %v2686_v52  ;;  %v4405_v52 = vand.u32 4294901760, %v3607_v31  ;;  %v3754_v36 = vsub.f32 %v3452_v0, %v4401_v8  ;;  %v3764_v54 = vsub.f32 %v3454_v6, %v4402_v53  ;;  %v4412_v4 = vand.u32 4294901760, %v3694_v60 }
  0xa2   : > { %2667 = vmatprep.subr.bf16.mxu1 %v4469_v63  ;;  %2688 = vmatprep.subr.bf16.mxu0 %v4469_v63  ;;  %v3769_v22 = vsub.f32 %v3598_v45, %v4404_v47  ;;  %v3780_v23 = vsub.f32 %v3456_v7, %v4407_v49  ;;  %v1234_v53 = vsub.f32 %v3687_v12, %v4410_v46  ;;  %v4415_v19 = vand.u32 4294901760, %v3699_v15 }
  0xa3   : > { %v3774_v8 = vsub.f32 %v3607_v31, %v4405_v52  ;;  %v4419_v47 = vand.u32 4294901760, %v3702_v55  ;;  %v3790_v52 = vsub.f32 %v3458_v9, %v4411_v35  ;;  %v1241_v10 = vsub.f32 %v3694_v60, %v4412_v4 }
  0xa4   : > { %v4418_v17 = vand.u32 4294901760, %v3723_v29  ;;  %v1235_v46 = vand.u32 4294901760, %v1234_v53  ;;  %v1248_v37 = vsub.f32 %v3699_v15, %v4415_v19  ;;  %v4422_v49 = vand.u32 4294901760, %v3728_v59 }
  0xa5   : > { %v1255_v35 = vsub.f32 %v3702_v55, %v4419_v47  ;;  %v1242_v58 = vand.u32 4294901760, %v1241_v10  ;;  %v4425_v16 = vand.u32 4294901760, %v3733_v51  ;;  %v4479_v53 = vand.u32 4294901760, %v3497_v40 }
  0xa6   : > { %v1262_v4 = vsub.f32 %v3723_v29, %v4418_v17  ;;  %v1249_v25 = vand.u32 4294901760, %v1248_v37  ;;  %v4481_v37 = vand.u32 4294901760, %v3564_v11  ;;  %v4428_v32 = vand.u32 4294901760, %v3754_v36 }
  0xa7   : > { %v3814_v19 = vsub.f32 %v3497_v40, %v4479_v53  ;;  %v1256_v18 = vand.u32 4294901760, %v1255_v35  ;;  %v3819_v17 = vpack.c.bf16 %v1242_v58, %v1235_v46  ;;  %v1276_v53 = vsub.f32 %v3733_v51, %v4425_v16 }
  0xa8   : > { %v1263_v47 = vand.u32 4294901760, %v1262_v4  ;;  %v3830_v35 = vsub.f32 %v3564_v11, %v4481_v37  ;;  %v4431_v16 = vand.u32 4294901760, %v3764_v54  ;;  %vm383_vm5 = vcmp.lt.s32.totalorder %v3758_v21, 200 }
  0xa9   : > { %2669 = vmatpush3.bf16.xpose.msra.mxu1 %v3674_v33  ;;  %2690 = vmatpush3.bf16.xpose.msra.mxu0 %v2689_v5  ;;  %4480 = vst [vmem:[#allocation35_spill] sm:$0xff] %v3819_v17  ;;  %v1269_v5 = vsub.f32 %v3728_v59, %v4422_v49  ;;  %v3832_v10 = vpack.c.bf16 %v1256_v18, %v1249_v25  ;;  %v4483_v33 = vand.u32 4294901760, %v3739_v27  ;;  %v1277_v49 = vand.u32 4294901760, %v1276_v53 }
  0xaa   : > { %2670 = vmatprep.subr.bf16.mxu1 %v4469_v63  ;;  %2691 = vmatprep.subr.bf16.mxu0 %v4469_v63  ;;  %v4484_v17 = vand.u32 4294901760, %v3677_v38  ;;  %v4434_v18 = vand.u32 4294901760, %v3780_v23  ;;  %v4432_v25 = vand.u32 4294901760, %v3790_v52  ;;  %v4437_v34 = vand.u32 4294901760, %v3830_v35 }
  0xab   : > { %4482 = vst [vmem:[#allocation36_spill] sm:$0xff] %v3832_v10  ;;  %v1283_v46 = vsub.f32 %v3739_v27, %v4483_v33  ;;  %v1270_v4 = vand.u32 4294901760, %v1269_v5  ;;  %v1290_v33 = vsub.f32 %v3754_v36, %v4428_v32  ;;  %v1297_v5 = vsub.f32 %v3764_v54, %v4431_v16 }
  0xac   : > { %v677_v37 = vsub.f32 %v3677_v38, %v4484_v17  ;;  %v1304_v17 = vsub.f32 %v3780_v23, %v4434_v18  ;;  %v4443_v16 = vand.u32 4294901760, %v3769_v22 }
  0xad   : > { %v1284_v30 = vand.u32 4294901760, %v1283_v46  ;;  %v3846_v10 = vpack.c.bf16 %v1270_v4, %v1263_v47  ;;  %v1311_v47 = vsub.f32 %v3790_v52, %v4432_v25  ;;  %v4433_v46 = vand.u32 4294901760, %v3814_v19 }
  0xae   : > { %v1291_v4 = vand.u32 4294901760, %v1290_v33  ;;  %v1298_v32 = vand.u32 4294901760, %v1297_v5  ;;  %v4440_v25 = vand.u32 4294901760, %v3774_v8  ;;  %v1325_v5 = vsub.f32 %v3830_v35, %v4437_v34 }
  0xaf   : > { %v3856_v58 = vpack.c.bf16 %v1284_v30, %v1277_v49  ;;  %v1305_v30 = vand.u32 4294901760, %v1304_v17  ;;  %v1312_v49 = vand.u32 4294901760, %v1311_v47  ;;  %v1318_v53 = vsub.f32 %v3814_v19, %v4433_v46 }
  0xb0   : > { %v3875_v33 = vpack.c.bf16 %v1298_v32, %v1291_v4  ;;  %v1339_v46 = vsub.f32 %v3774_v8, %v4440_v25  ;;  %v1326_v32 = vand.u32 4294901760, %v1325_v5 }
  0xb1   : > { %2672 = vmatpush3.bf16.xpose.msra.mxu1 %v3681_v39  ;;  %2693 = vmatpush3.bf16.xpose.msra.mxu0 %v3689_v1  ;;  %v1332_v1 = vsub.f32 %v3769_v22, %v4443_v16  ;;  %v3883_v17 = vpack.c.bf16 %v1312_v49, %v1305_v30  ;;  %v1319_v47 = vand.u32 4294901760, %v1318_v53  ;;  %v671_v53 = vand.u32 4294901760, %v3718_v50 }
  0xb2   : > { %2673 = vmatprep.subr.bf16.mxu1 %v4469_v63  ;;  %2694 = vmatprep.subr.bf16.mxu0 %v4469_v63  ;;  %v1340_v14 = vand.u32 4294901760, %v1339_v46  ;;  %v678_v49 = vand.u32 4294901760, %v677_v37  ;;  %v4489_v50 = vand.u32 4294901760, %v3702_v55  ;;  %v4495_v46 = vld [vmem:[#allocation22_spill] sm:$0xff] }
  0xb3   : > { %v1333_v4 = vand.u32 4294901760, %v1332_v1  ;;  %v3900_v25 = vpack.c.bf16 %v1326_v32, %v1319_v47  ;;  %v4485_v32 = vand.u32 4294901760, %v3687_v12  ;;  %v4486_v1 = vand.u32 4294901760, %v3694_v60 }
  0xb4   : > { %v2698_v47 = vpack.c.bf16 %v678_v49, %v671_v53  ;;  %v4491_v53 = vand.u32 4294901760, %v3438_v57  ;;  %v4498_v57 = vand.u32 4294901760, %v3448_v62  ;;  %v4502_v62 = vand.u32 4294901760, %v3454_v6 }
  0xb5   : > { %v3908_v34 = vpack.c.bf16 %v1340_v14, %v1333_v4  ;;  %v3919_v5 = vpack.c.bf16 %v4486_v1, %v4485_v32  ;;  %v4487_v14 = vmov 0.0   ;;  %v4490_v4 = vand.u32 4294901760, %v3435_v56 }
  0xb6   : > { %v4492_v1 = vand.u32 4294901760, %v3723_v29  ;;  %v4497_v56 = vand.u32 4294901760, %v3445_v61  ;;  %v4501_v61 = vand.u32 4294901760, %v3452_v0  ;;  %v4505_v6 = vpack.c.bf16 %v3501_v42, %v3499_v41 }
  0xb7   : > { %v3938_v49 = vpack.c.bf16 %v4491_v53, %v4490_v4  ;;  %v4499_v53 = vand.u32 4294901760, %v3733_v51 }
  0xb8   : > { %v3956_v4 = vpack.c.bf16 %v4498_v57, %v4497_v56  ;;  %v3979_v56 = vsel %vm383_vm5, 1.0, %v4487_v14  ;;  %v4503_v57 = vand.u32 4294901760, %v3754_v36 }
  0xb9   : > { %2675 = vmatpush3.bf16.xpose.msra.mxu1 %v3704_v28  ;;  %2696 = vmatpush3.bf16.xpose.msra.mxu0 %v3709_v26  ;;  %v4488_v26 = vand.u32 4294901760, %v3699_v15  ;;  %v3990_v0 = vsub.f32 %v3979_v56, %v3979_v56 }
  0xba   : > { %2697 = vmatprep.subr.bf16.mxu0 %v4469_v63  ;;  %2796 = vmatprep.subr.bf16.mxu1 %v4469_v63 }
  0xbb   : > { %v3929_v37 = vpack.c.bf16 %v4489_v50, %v4488_v26  ;;  %v4441_v26 = vmov 1.0   ;;  %v4494_v50 = vld [vmem:[#allocation23_spill] sm:$0xff] }
  0xbc   : > { %v4496_v30 = vpack.c.bf16 %v4494_v50, %v4495_v46 }
  0xc0   : > { %2265 = vmatmul.mubr.f32.vlgmr.msra.gmra.mrb[0].mxu1 %v4487_v14 }
  0xc1   : > { %2699 = vmatpush3.bf16.xpose.msra.mxu0 %v2698_v47  ;;  %2798 = vmatpush3.bf16.msra.mxu1 %v3642_v2  ;;  %v4493_v47 = vand.u32 4294901760, %v3728_v59 }
  0xc2   : > { %2799 = vmatprep.subr.bf16.mxu1 %v4469_v63  ;;  %2700 = vmatprep.subr.bf16.mxu0 %v4469_v63 }
  0xc3   : > { %2474 = vmatprep.mubr.msk.f32.mxu1 %vm3190_vm0, %v4487_v14  ;;  %v3945_v32 = vpack.c.bf16 %v4493_v47, %v4492_v1  ;;  %v4500_v1 = vand.u32 4294901760, %v3739_v27 }
  0xc5   : > { %2801 = vmatpush3.bf16.msra.mxu1 %v3653_v3  ;;  %v3965_v47 = vpack.c.bf16 %v4500_v1, %v4499_v53  ;;  %v4504_v53 = vand.u32 4294901760, %v3764_v54 }
  0xc6   : > { %2802 = vmatprep.subr.bf16.mxu1 %v4469_v63 }
  0xc7   : > { %v3986_v1 = vpack.c.bf16 %v4504_v53, %v4503_v57  ;;  %v4508_v57 = vand.u32 4294901760, %v3780_v23  ;;  %v4509_v53 = vand.u32 4294901760, %v3790_v52 }
  0xc8   : > { %2300 = vmatmul.mubr.f32.vlgmr.msra.gmra.mrb[0].mxu0 %v4441_v26  ;;  %v4513_v26 = vand.u32 4294901760, %v3830_v35 }
  0xc9   : > { %2702 = vmatpush3.bf16.xpose.msra.mxu0 %v4496_v30  ;;  %2804 = vmatpush3.bf16.msra.mxu1 %v3938_v49  ;;  %v3974_v30 = vpack.c.bf16 %v4502_v62, %v4501_v61  ;;  %v4506_v61 = vand.u32 4294901760, %v3456_v7  ;;  %v4507_v62 = vand.u32 4294901760, %v3458_v9  ;;  %v4008_v18 = vpack.c.bf16 %v4509_v53, %v4508_v57 }
  0xca   : > { %2805 = vmatprep.subr.bf16.mxu1 %v4469_v63  ;;  %2703 = vmatprep.subr.bf16.mxu0 %v4469_v63  ;;  %v4510_v7 = vand.u32 4294901760, %v3497_v40  ;;  %v4511_v9 = vand.u32 4294901760, %v3564_v11  ;;  %v4514_v53 = vpack.c.bf16 %v3512_v48, %v3504_v43  ;;  %v4515_v40 = vand.u32 4294901760, %v3598_v45  ;;  %v4519_v45 = vld [vmem:[#allocation25_spill] sm:$0xff] }
  0xcb   : > { %2334 = vmatprep.mubr.msk.f32.mxu0 %vm3190_vm0, %v4487_v14  ;;  %v4000_v39 = vpack.c.bf16 %v4507_v62, %v4506_v61  ;;  %v4512_v62 = vand.u32 4294901760, %v3814_v19  ;;  %v4516_v11 = vand.u32 4294901760, %v3607_v31  ;;  %v4520_v31 = vpack.c.bf16 %v3570_v13, %v4519_v45 }
  0xcc   : > { %v4016_v61 = vpack.c.bf16 %v4511_v9, %v4510_v7  ;;  %v4518_v9 = vand.u32 4294901760, %v3774_v8 }
  0xcd   : > { %2807 = vmatpush3.bf16.msra.mxu1 %v3956_v4  ;;  %v4023_v16 = vpack.c.bf16 %v4513_v26, %v4512_v62  ;;  %v4036_v7 = vpack.c.bf16 %v4516_v11, %v4515_v40  ;;  %v4517_v26 = vand.u32 4294901760, %v3769_v22  ;;  %v4522_v40 = vld [vmem:[#allocation36_spill] sm:$0xff]  ;;  %v4524_v11 = vld [vmem:[#allocation27_spill] sm:$0xff] }
  0xce   : > { %2808 = vmatprep.subr.bf16.mxu1 %v4469_v63 }
  0xcf   : > { %v4044_v62 = vpack.c.bf16 %v4518_v9, %v4517_v26  ;;  %v4526_v26 = vld [vmem:[#allocation30_spill] sm:$0xff] }
  0xd0   : > { %v4527_v9 = vpack.c.bf16 %v3610_v24, %v4526_v26 }
  0xd1   : > { %2705 = vmatpush3.bf16.xpose.msra.mxu0 %v4505_v6  ;;  %2810 = vmatpush3.bf16.msra.mxu1 %v3974_v30  ;;  %v4444_v6 = vand.u32 4294901760, %v3990_v0 }
  0xd2   : > { %2811 = vmatprep.subr.bf16.mxu1 %v4469_v63  ;;  %2706 = vmatprep.subr.bf16.mxu0 %v4469_v63 }
  0xd3   : > { %v1223_v57 = vsub.f32 %v3990_v0, %v4444_v6 }
  0xd5   : > { %2813 = vmatpush3.bf16.msra.mxu1 %v4000_v39  ;;  %v1224_v6 = vand.u32 4294901760, %v1223_v57  ;;  %v4523_v57 = vld [vmem:[#allocation28_spill] sm:$0xff] }
  0xd6   : > { %2814 = vmatprep.subr.bf16.mxu1 %v4469_v63 }
  0xd9   : > { %2708 = vmatpush3.bf16.xpose.msra.mxu0 %v4514_v53  ;;  %2816 = vmatpush3.bf16.msra.mxu1 %v4016_v61  ;;  %v4521_v53 = vld [vmem:[#allocation35_spill] sm:$0xff] }
  0xda   : > { %2817 = vmatprep.subr.bf16.mxu1 %v4469_v63  ;;  %2709 = vmatprep.subr.bf16.mxu0 %v4469_v63 }
  0xdd   : > { %2819 = vmatpush3.bf16.msra.mxu1 %v4036_v7 }
  0xde   : > { %2820 = vmatprep.subr.bf16.mxu1 %v4469_v63 }
  0xe0   : > { %2475 = vmatmul.mubr.f32.vlgmr.msra.gmra.mrb[2].mxu1 %v1224_v6  ;;  %v4525_v6 = vpack.c.bf16 %v4523_v57, %v4524_v11 }
  0xe1   : > { %2711 = vmatpush3.bf16.xpose.msra.mxu0 %v4520_v31  ;;  %2822 = vmatpush3.bf16.msra.mxu1 %v4521_v53 }
  0xe2   : > { %2823 = vmatprep.subr.bf16.mxu1 %v4469_v63  ;;  %2712 = vmatprep.subr.bf16.mxu0 %v4469_v63 }
  0xe3   : > { %2509 = vmatprep.mubr.msk.f32.mxu1 %vm3190_vm0, %v4487_v14 }
  0xe5   : > { %2825 = vmatpush3.bf16.msra.mxu1 %v4522_v40 }
  0xe6   : > { %2826 = vmatprep.subr.bf16.mxu1 %v4469_v63 }
  0xe9   : > { %2714 = vmatpush3.bf16.xpose.msra.mxu0 %v4525_v6  ;;  %2828 = vmatpush3.bf16.msra.mxu1 %v3846_v10  ;;  %v4528_v10 = vld [vmem:[#allocation31_spill] sm:$0xff] }
  0xea   : > { %2829 = vmatprep.subr.bf16.mxu1 %v4469_v63  ;;  %2715 = vmatprep.subr.bf16.mxu0 %v4469_v63  ;;  %v4529_v31 = vpack.c.bf16 %v3629_v20, %v4528_v10 }
  0xed   : > { %2831 = vmatpush3.bf16.msra.mxu1 %v3856_v58  ;;  %v4530_v58 = vmov 1.0  }
  0xee   : > { %2832 = vmatprep.subr.bf16.mxu1 %v4469_v63 }
  0xf1   : > { %2717 = vmatpush3.bf16.xpose.msra.mxu0 %v4527_v9  ;;  %2834 = vmatpush3.bf16.msra.mxu1 %v3875_v33  ;;  %v4531_v33 = vpack.c.bf16 %v3677_v38, %v3661_v44 }
  0xf2   : > { %2835 = vmatprep.subr.bf16.mxu1 %v4469_v63  ;;  %2718 = vmatprep.subr.bf16.mxu0 %v4469_v63 }
  0xf5   : > { %2837 = vmatpush3.bf16.msra.mxu1 %v3883_v17  ;;  %v4532_v17 = vpack.c.bf16 %v3694_v60, %v3687_v12  ;;  %v4535_v12 = vpack.c.bf16 %v3728_v59, %v3723_v29  ;;  %v4536_v60 = vpack.c.bf16 %v3739_v27, %v3733_v51  ;;  %v4539_v29 = vpack.c.bf16 %v3790_v52, %v3780_v23  ;;  %v4540_v59 = vld [vmem:[#allocation26_spill] sm:$0xff]  ;;  %v4543_v27 = vld [vmem:[#allocation29_spill] sm:$0xff] }
  0xf6   : > { %2838 = vmatprep.subr.bf16.mxu1 %v4469_v63  ;;  %v4541_v51 = vpack.c.bf16 %v3830_v35, %v3814_v19  ;;  %v4544_v19 = vld [vmem:[#allocation32_spill] sm:$0xff]  ;;  %v4546_v52 = vld [vmem:[#allocation34_spill] sm:$0xff]  ;;  %v4549_v23 = vand.u32 4294901760, %v4494_v50  ;;  %v4553_v50 = vand.u32 4294901760, %v3512_v48  ;;  %v4557_v48 = vand.u32 4294901760, %v4523_v57 }
  0xf9   : > { %2720 = vmatpush3.bf16.xpose.msra.mxu0 %v4529_v31  ;;  %2840 = vmatpush3.bf16.msra.mxu1 %v3900_v25  ;;  %v4534_v25 = vld [vmem:[#allocation21_spill] sm:$0xff] }
  0xfa   : > { %2841 = vmatprep.subr.bf16.mxu1 %v4469_v63  ;;  %2721 = vmatprep.subr.bf16.mxu0 %v4469_v63 }
  0xfd   : > { %2843 = vmatpush3.bf16.msra.mxu1 %v3908_v34  ;;  %v4533_v34 = vpack.c.bf16 %v3702_v55, %v3699_v15  ;;  %v4537_v15 = vld [vmem:[#allocation24_spill] sm:$0xff]  ;;  %v4538_v55 = vpack.c.bf16 %v3764_v54, %v3754_v36  ;;  %v4542_v54 = vpack.c.bf16 %v3774_v8, %v3769_v22  ;;  %v4545_v8 = vld [vmem:[#allocation33_spill] sm:$0xff]  ;;  %v4547_v22 = vand.u32 4294901760, %v3990_v0 }
  0xfe   : > { %2844 = vmatprep.subr.bf16.mxu1 %v4469_v63  ;;  %v4548_v36 = vand.u32 4294901760, %v4495_v46  ;;  %v4551_v46 = vand.u32 4294901760, %v3501_v42  ;;  %v4555_v42 = vand.u32 4294901760, %v3570_v13 }
 0x100   : > { %2510 = vmatmul.mubr.msk.f32.vlgmr.msra.gmra.mrb[4].mxu1 %vm383_vm5, %v4530_v58  ;;  %v2749_v35 = vpack.c.bf16 %v4549_v23, %v4548_v36 }
 0x101   : > { %2723 = vmatpush3.bf16.xpose.msra.mxu0 %v4531_v33  ;;  %2846 = vmatpush3.bf16.msra.mxu1 %v4532_v17 }
 0x102   : > { %2847 = vmatprep.subr.bf16.mxu1 %v4469_v63  ;;  %2724 = vmatprep.subr.bf16.mxu0 %v4469_v63 }
 0x103   : > { %2544 = vmatprep.mubr.msk.f32.mxu1 %vm3190_vm0, %v4487_v14 }
 0x105   : > { %2849 = vmatpush3.bf16.msra.mxu1 %v4533_v34 }
 0x106   : > { %2850 = vmatprep.subr.bf16.mxu1 %v4469_v63 }
 0x108   : > { %2335 = vmatmul.mubr.f32.vlgmr.msra.gmra.mrb[0].mxu0 %v4487_v14 }
 0x109   : > { %2726 = vmatpush3.bf16.xpose.msra.mxu0 %v4534_v25  ;;  %2852 = vmatpush3.bf16.msra.mxu1 %v4535_v12 }
 0x10a   : > { %2853 = vmatprep.subr.bf16.mxu1 %v4469_v63  ;;  %2727 = vmatprep.subr.bf16.mxu0 %v4469_v63 }
 0x10b   : > { %2369 = vmatprep.mubr.msk.f32.mxu0 %vm3190_vm0, %v4487_v14 }
 0x10d   : > { %2855 = vmatpush3.bf16.msra.mxu1 %v4536_v60 }
 0x10e   : > { %2856 = vmatprep.subr.bf16.mxu1 %v4469_v63 }
 0x111   : > { %2729 = vmatpush3.bf16.xpose.msra.mxu0 %v4537_v15  ;;  %2858 = vmatpush3.bf16.msra.mxu1 %v4538_v55 }
 0x112   : > { %2859 = vmatprep.subr.bf16.mxu1 %v4469_v63  ;;  %2730 = vmatprep.subr.bf16.mxu0 %v4469_v63 }
 0x115   : > { %2861 = vmatpush3.bf16.msra.mxu1 %v4539_v29 }
 0x116   : > { %2862 = vmatprep.subr.bf16.mxu1 %v4469_v63 }
 0x119   : > { %2732 = vmatpush3.bf16.xpose.msra.mxu0 %v4540_v59  ;;  %2864 = vmatpush3.bf16.msra.mxu1 %v4541_v51 }
 0x11a   : > { %2865 = vmatprep.subr.bf16.mxu1 %v4469_v63  ;;  %2733 = vmatprep.subr.bf16.mxu0 %v4469_v63 }
 0x11d   : > { %2867 = vmatpush3.bf16.msra.mxu1 %v4542_v54 }
 0x11e   : > { %2868 = vmatprep.subr.bf16.mxu1 %v4469_v63 }
 0x120   : > { %2545 = vmatmul.mubr.f32.vlgmr.msra.gmra.mrb[6].mxu1 %v3990_v0 }
 0x121   : > { %2735 = vmatpush3.bf16.xpose.msra.mxu0 %v4543_v27  ;;  %2870 = vmatpush3.bf16.msra.mxu1 %v3642_v2 }
 0x122   : > { %2871 = vmatprep.subr.bf16.mxu1 %v4469_v63  ;;  %2736 = vmatprep.subr.bf16.mxu0 %v4469_v63 }
 0x123   : > { %2579 = vmatprep.mubr.msk.f32.mxu1 %vm3190_vm0, %v4487_v14 }
 0x125   : > { %2873 = vmatpush3.bf16.msra.mxu1 %v3653_v3 }
 0x126   : > { %2874 = vmatprep.subr.bf16.mxu1 %v4469_v63 }
 0x129   : > { %2738 = vmatpush3.bf16.xpose.msra.mxu0 %v4544_v19  ;;  %2876 = vmatpush3.bf16.msra.mxu1 %v3938_v49 }
 0x12a   : > { %2877 = vmatprep.subr.bf16.mxu1 %v4469_v63  ;;  %2739 = vmatprep.subr.bf16.mxu0 %v4469_v63 }
 0x12d   : > { %2879 = vmatpush3.bf16.msra.mxu1 %v3956_v4 }
 0x12e   : > { %2880 = vmatprep.subr.bf16.mxu1 %v4469_v63 }
 0x131   : > { %2741 = vmatpush3.bf16.xpose.msra.mxu0 %v4545_v8  ;;  %2882 = vmatpush3.bf16.msra.mxu1 %v3974_v30 }
 0x132   : > { %2883 = vmatprep.subr.bf16.mxu1 %v4469_v63  ;;  %2742 = vmatprep.subr.bf16.mxu0 %v4469_v63 }
 0x135   : > { %2885 = vmatpush3.bf16.msra.mxu1 %v4000_v39 }
 0x136   : > { %2886 = vmatprep.subr.bf16.mxu1 %v4469_v63 }
 0x139   : > { %2744 = vmatpush3.bf16.xpose.msra.mxu0 %v4546_v52  ;;  %2888 = vmatpush3.bf16.msra.mxu1 %v4016_v61 }
 0x13a   : > { %2889 = vmatprep.subr.bf16.mxu1 %v4469_v63  ;;  %2745 = vmatprep.subr.bf16.mxu0 %v4469_v63 }
 0x13d   : > { %2891 = vmatpush3.bf16.msra.mxu1 %v4036_v7 }
 0x13e   : > { %2892 = vmatprep.subr.bf16.mxu1 %v4469_v63 }
 0x140   : > { %2580 = vmatmul.mubr.f32.vlgmr.msra.gmra.mrb[8].mxu1 %v4547_v22 }
 0x141   : > { %2747 = vmatpush3.bf16.xpose.msra.mxu0 %v3704_v28  ;;  %2894 = vmatpush3.bf16.msra.mxu1 %v3919_v5  ;;  %v4550_v5 = vand.u32 4294901760, %v3499_v41  ;;  %v4554_v41 = vand.u32 4294901760, %v4519_v45 }
 0x142   : > { %2895 = vmatprep.subr.bf16.mxu1 %v4469_v63  ;;  %2748 = vmatprep.subr.bf16.mxu0 %v4469_v63 }
 0x143   : > { %2614 = vmatprep.mubr.msk.f32.mxu1 %vm3190_vm0, %v4487_v14 }
 0x145   : > { %2897 = vmatpush3.bf16.msra.mxu1 %v3929_v37  ;;  %v2752_v37 = vpack.c.bf16 %v4551_v46, %v4550_v5 }
 0x146   : > { %2898 = vmatprep.subr.bf16.mxu1 %v4469_v63 }
 0x148   : > { %2370 = vmatmul.mubr.f32.vlgmr.msra.gmra.mrb[0].mxu0 %v4487_v14 }
 0x149   : > { %2750 = vmatpush3.bf16.xpose.msra.mxu0 %v2749_v35  ;;  %2900 = vmatpush3.bf16.msra.mxu1 %v3945_v32  ;;  %v4552_v32 = vand.u32 4294901760, %v3504_v43  ;;  %v4556_v43 = vand.u32 4294901760, %v4524_v11 }
 0x14a   : > { %2901 = vmatprep.subr.bf16.mxu1 %v4469_v63  ;;  %2751 = vmatprep.subr.bf16.mxu0 %v4469_v63 }
 0x14b   : > { %2404 = vmatprep.mubr.msk.f32.mxu0 %vm3190_vm0, %v4487_v14  ;;  %v2761_v13 = vpack.c.bf16 %v4557_v48, %v4556_v43 }
 0x14d   : > { %2903 = vmatpush3.bf16.msra.mxu1 %v3965_v47  ;;  %v2755_v47 = vpack.c.bf16 %v4553_v50, %v4552_v32 }
 0x14e   : > { %2904 = vmatprep.subr.bf16.mxu1 %v4469_v63 }
 0x151   : > { %2753 = vmatpush3.bf16.xpose.msra.mxu0 %v2752_v37  ;;  %2906 = vmatpush3.bf16.msra.mxu1 %v3986_v1 }
 0x152   : > { %2907 = vmatprep.subr.bf16.mxu1 %v4469_v63  ;;  %2754 = vmatprep.subr.bf16.mxu0 %v4469_v63 }
 0x155   : > { %2909 = vmatpush3.bf16.msra.mxu1 %v4008_v18  ;;  %v2758_v18 = vpack.c.bf16 %v4555_v42, %v4554_v41  ;;  %v1131_v41 = vld [vmem:[#allocation2] sm:$0x1] }
 0x156   : > { %2910 = vmatprep.subr.bf16.mxu1 %v4469_v63 }
 0x159   : > { %2756 = vmatpush3.bf16.xpose.msra.mxu0 %v2755_v47  ;;  %2912 = vmatpush3.bf16.msra.mxu1 %v4023_v16 }
 0x15a   : > { %2913 = vmatprep.subr.bf16.mxu1 %v4469_v63  ;;  %2757 = vmatprep.subr.bf16.mxu0 %v4469_v63 }
 0x15d   : > { %2915 = vmatpush3.bf16.msra.mxu1 %v4044_v62 }
 0x15e   : > { %2916 = vmatprep.subr.bf16.mxu1 %v4469_v63 }
 0x160   : > { %2615 = vmatmul.mubr.msk.f32.vlgmr.msra.gmra.mrb[10].mxu1 %vm383_vm5, %v4530_v58 }
 0x161   : > { %2759 = vmatpush3.bf16.xpose.msra.mxu0 %v2758_v18  ;;  %2918 = vmatpush3.bf16.msra.mxu1 %v3642_v2  ;;  %v4558_v2 = vand.u32 4294901760, %v4526_v26 }
 0x162   : > { %2919 = vmatprep.subr.bf16.mxu1 %v4469_v63  ;;  %2760 = vmatprep.subr.bf16.mxu0 %v4469_v63 }
 0x163   : > { %2649 = vmatprep.mubr.msk.f32.mxu1 %vm3190_vm0, %v4487_v14 }
 0x165   : > { %2921 = vmatpush3.bf16.msra.mxu1 %v3653_v3  ;;  %v4559_v3 = vand.u32 4294901760, %v3610_v24  ;;  %v4562_v24 = vand.u32 4294901760, %v3661_v44 }
 0x166   : > { %2922 = vmatprep.subr.bf16.mxu1 %v4469_v63 }
 0x167   : > { %v2764_v16 = vpack.c.bf16 %v4559_v3, %v4558_v2  ;;  %v4564_v3 = vld [vmem:[#allocation20_spill] sm:$0xff] (!%p2020_p2) }
 0x169   : > { %2762 = vmatpush3.bf16.xpose.msra.mxu0 %v2761_v13  ;;  %2924 = vmatpush3.bf16.msra.mxu1 %v3938_v49  ;;  %v4560_v49 = vand.u32 4294901760, %v4528_v10  ;;  %v1138_v10 = vld [vmem:[#allocation3] sm:$0x1] }
 0x16a   : > { %2925 = vmatprep.subr.bf16.mxu1 %v4469_v63  ;;  %2763 = vmatprep.subr.bf16.mxu0 %v4469_v63 }
 0x16d   : > { %2927 = vmatpush3.bf16.msra.mxu1 %v3956_v4  ;;  %v4561_v4 = vand.u32 4294901760, %v3629_v20 }
 0x16e   : > { %2928 = vmatprep.subr.bf16.mxu1 %v4469_v63 }
 0x16f   : > { %v2767_v1 = vpack.c.bf16 %v4561_v4, %v4560_v49  ;;  %v1835_v49 = vmul.f32 (!%p2020_p2), %v4564_v3, %v4564_v3 }
 0x171   : > { %2765 = vmatpush3.bf16.xpose.msra.mxu0 %v2764_v16  ;;  %2930 = vmatpush3.bf16.msra.mxu1 %v3974_v30 }
 0x172   : > { %2931 = vmatprep.subr.bf16.mxu1 %v4469_v63  ;;  %2766 = vmatprep.subr.bf16.mxu0 %v4469_v63 }
 0x175   : > { %2933 = vmatpush3.bf16.msra.mxu1 %v4000_v39  ;;  %v4563_v39 = vand.u32 4294901760, %v3677_v38 }
 0x176   : > { %2934 = vmatprep.subr.bf16.mxu1 %v4469_v63 }
 0x177   : > { %v2770_v30 = vpack.c.bf16 %v4563_v39, %v4562_v24  ;;  %v1836_v24 = vsel (!%p2020_p2), %vm1128_vm9, %v1835_v49, 0.0 }
 0x179   : > { %2768 = vmatpush3.bf16.xpose.msra.mxu0 %v2767_v1  ;;  %2936 = vmatpush3.bf16.msra.mxu1 %v4016_v61 }
 0x17a   : > { %2937 = vmatprep.subr.bf16.mxu1 %v4469_v63  ;;  %2769 = vmatprep.subr.bf16.mxu0 %v4469_v63 }
 0x17d   : > { %2939 = vmatpush3.bf16.msra.mxu1 %v4036_v7 }
 0x180   : > { %2650 = vmatmul.mubr.msk.f32.vlgmr.msra.gmra.mrb[12].mxu1 %vm383_vm5, %v4530_v58 }
 0x181   : > { %2771 = vmatpush3.bf16.xpose.msra.mxu0 %v2770_v30 }
 0x182   : > { %2772 = vmatprep.subr.bf16.mxu0 %v4469_v63 }
 0x188   : > { %2405 = vmatmul.mubr.f32.vlgmr.msra.gmra.mrb[0].mxu0 %v4530_v58 }
 0x189   : > { %2774 = vmatpush3.bf16.xpose.msra.mxu0 %v4534_v25  ;;  %2439 = vmatprep.mubr.msk.f32.mxu0 %vm3190_vm0, %v4487_v14 }
 0x18a   : > { %2775 = vmatprep.subr.bf16.mxu0 %v4469_v63 }
 0x191   : > { %2777 = vmatpush3.bf16.xpose.msra.mxu0 %v4537_v15 }
 0x192   : > { %2778 = vmatprep.subr.bf16.mxu0 %v4469_v63 }
 0x193   : > { %v564_v38 = vpop.f32.mrb[0].mxu1 }
 0x194   : > { %v2266_v44 = vpop.f32.mrb[1].mxu1 }
 0x199   : > { %2780 = vmatpush3.bf16.xpose.msra.mxu0 %v4540_v59 }
 0x19a   : > { %2781 = vmatprep.subr.bf16.mxu0 %v4469_v63 }
 0x1a1   : > { %2783 = vmatpush3.bf16.xpose.msra.mxu0 %v4543_v27 }
 0x1a2   : > { %2784 = vmatprep.subr.bf16.mxu0 %v4469_v63 }
 0x1a9   : > { %2786 = vmatpush3.bf16.xpose.msra.mxu0 %v4544_v19 }
 0x1aa   : > { %2787 = vmatprep.subr.bf16.mxu0 %v4469_v63 }
 0x1b1   : > { %2789 = vmatpush3.bf16.xpose.msra.mxu0 %v4545_v8 }
 0x1b2   : > { %2790 = vmatprep.subr.bf16.mxu0 %v4469_v63 }
 0x1b3   : > { %v1226_v20 = vpop.f32.mrb[2].mxu1 }
 0x1b4   : > { %v2476_v21 = vpop.f32.mrb[3].mxu1 }
 0x1b9   : > { %2792 = vmatpush3.bf16.xpose.msra.mxu0 %v4546_v52 }
 0x1ba   : > { %2793 = vmatprep.subr.bf16.mxu0 %v4469_v63 }
 0x1c1   : > { %2795 = vmatpush3.bf16.xpose.msra.mxu0 %v3704_v28 }
 0x1c8   : > { %2440 = vmatmul.mubr.f32.vlgmr.msra.gmra.mrb[0].mxu0 %v4530_v58  ;;  %v304_v58 = vstv %s4575_s15 }
 0x1c9   : > { %v307_v17 = vand.u32 2147483647, %v304_v58  ;;  %v306_v51 = vmax.f32 %v304_v58, 0.0 }
 0x1cb   : > { %v308_v34 = vsub.f32 0.0, %v307_v17 }
 0x1cd   : > { %v309_v25 = vmul.f32 1.442695, %v308_v34 }
 0x1cf   : > { %3029 = vpow2.f32 %v309_v25 }
 0x1d3   : > { %v1377_v0 = vpop.f32.mrb[4].mxu1 }
 0x1d4   : > { %v1378_v61 = vadd.f32 %v1377_v0, %v1226_v20  ;;  %v2511_v7 = vpop.f32.mrb[5].mxu1 }
 0x1d9   : > { %v3030_v12 = vpop.eup %3029 }
 0x1da   : > { %v311_v60 = vadd.f32 1.0, %v3030_v12 }
 0x1dc   : > { %3031 = vlog2.f32 %v311_v60 }
 0x1e6   : > { %v3032_v59 = vpop.eup %3031 }
 0x1e7   : > { %v313_v54 = vmul.f32 0.6931472, %v3032_v59 }
 0x1e9   : > { %v314_v19 = vadd.f32 %v313_v54, %v306_v51 }
 0x1f3   : > { %v1481_v62 = vpop.f32.mrb[6].mxu1 }
 0x1f4   : > { %v1482_v45 = vadd.f32 %v1481_v62, %v1378_v61  ;;  %v2546_v53 = vpop.f32.mrb[7].mxu1 }
 0x213   : > { %v1570_v40 = vpop.f32.mrb[8].mxu1 }
 0x214   : > { %v1571_v57 = vadd.f32 %v1570_v40, %v1482_v45  ;;  %v2581_v11 = vpop.f32.mrb[9].mxu1 }
 0x233   : > { %v1689_v6 = vpop.f32.mrb[10].mxu1 }
 0x234   : > { %v1690_v26 = vadd.f32 %v1689_v6, %v1571_v57  ;;  %v2616_v9 = vpop.f32.mrb[11].mxu1 }
 0x253   : > { %v1776_v31 = vpop.f32.mrb[12].mxu1 }
 0x254   : > { %v1777_v63 = vadd.f32 %v1776_v31, %v1690_v26  ;;  %v2651_v33 = vpop.f32.mrb[13].mxu1 }
 0x256   : > { %v1780_v28 = vadd.f32 %v1777_v63, %v1138_v10 }
 0x258   : > { %1781 = vst [vmem:[#allocation3] sm:$0x1] %v1780_v28 }
 0x29b   : > { %v1106_v15 = vpop.f32.mrb[0].mxu0 }
 0x29c   : > { %v2940_v55 = vadd.f32 %v1106_v15, %v564_v38  ;;  %v2441_v29 = vpop.f32.mrb[1].mxu0 }
 0x29e   : > { %3033 = vrsqrt.f32 %v2940_v55  ;;  %vm1112_vm0 = vcmp.eq.f32.partialorder %v2940_v55, inf  ;;  %v1115_v52 = vand.u32 2147483648, %v2940_v55  ;;  %vm1114_vm6 = vcmp.eq.f32.partialorder %v2940_v55, 0.0 }
 0x2a8   : > { %v3034_v27 = vpop.eup %3033 }
 0x2a9   : > { %v1111_v8 = vmul.f32 %v3034_v27, %v2940_v55 }
 0x2ab   : > { %v1113_v22 = vsel %vm1112_vm0, %v2940_v55, %v1111_v8 }
 0x2ac   : > { %v1116_v36 = vsel %vm1114_vm6, %v1115_v52, %v1113_v22 }
 0x2ad   : > { %vm1117_vm7 = vcmp.lt.f32.partialorder %v1116_v36, %v314_v19  ;;  %vm1121_vm8 = vcmp.gt.f32.partialorder %v1116_v36, %v314_v19  ;;  %v1132_v23 = vsub.f32 %v1116_v36, %v314_v19 }
 0x2ae   : > { %v2015_v35 = vsel %vm1117_vm7, 1.0, %v4487_v14  ;;  %v2016_v5 = vsel %vm1121_vm8, 1.0, %v4487_v14  ;;  %v1801_v14 = vld [vmem:[#allocation3] sm:$0x1] (!%p2020_p2) }
 0x2af   : > { %v1120_v46 = vmul.f32 %v2015_v35, %v3979_v56  ;;  %v1124_v37 = vmul.f32 %v2016_v5, %v3979_v56  ;;  %v1133_v50 = vand.u32 2147483647, %v1132_v23  ;;  %v4275_v2 = vmul.f32 (!%p2020_p2), 0.005, %v1801_v14 }
 0x2b1   : > { %v1126_v32 = vrot.slane %v1124_v37, 7  ;;  %v1134_v47 = vadd.f32 %v1124_v37, %v1120_v46  ;;  %1785 = sbr.rel (%p2020_p2) target bundleno = 1124 (0x464), region = 52  ;;  %v1814_v56 = vmul.f32 (!%p2020_p2), %v4275_v2, %v4275_v2  ;;  %v1803_v16 = vmul.f32 (!%p2020_p2), %v4275_v2, %v4564_v3 }
 0x2b3   : > { %v1129_v42 = vsel %vm1128_vm9, %v1120_v46, %v1126_v32  ;;  %v1135_v18 = vmul.f32 %v1134_v47, %v1133_v50  ;;  %v1815_v4 = vsel (!%p2020_p2), %vm1128_vm9, %v1814_v56, 0.0  ;;  %v1804_v1 = vsel (!%p2020_p2), %vm1128_vm9, %v1803_v16, 0.0  ;;  %v4565_v47 = vld [vmem:[#allocation17_spill] sm:$0xff] (!%p2020_p2) }
 0x2b4   : > { %1130 = vst [vmem:[%s3356_s10] sm:$0x3] %v1129_v42  ;;  %1816 = vadd.xlane.f32.xlu1 (!%p2020_p2), %v1815_v4 }
 0x2b5   : > { %v1136_v43 = vadd.f32 %v1135_v18, %v1131_v41  ;;  %v1869_v41 = vsub.s32 (!%p2020_p2), 0, %v4565_v47 }
 0x2b7   : > { %1137 = vst [vmem:[#allocation2] sm:$0x1] %v1136_v43  ;;  %v4566_v43 = vld [vmem:[#allocation18_spill] sm:$0xff] (!%p2020_p2) }
 0x2b8   : > { %1837 = vadd.xlane.f32.xlu1 %v1836_v24 }
 0x2be   : > { %v1786_v48 = vld [vmem:[#allocation2] sm:$0x1] }
 0x2bf   : > { %v1787_v13 = vsel %vm1128_vm9, %v1786_v48, 0.0 }
 0x2c0   : > { %1788 = vadd.xlane.f32.xlu0 %v1787_v13 }
 0x2c4   : > { %1805 = vadd.xlane.f32.xlu0 %v1804_v1 }
 0x341   : > { %v1817_v44 = vpop.xlane.xlu1 %1816 }
 0x342   : > { %v1818_v0 = vrot.slane %v1817_v44, 4 }
 0x344   : > { %v1819_v7 = vadd.f32 %v1818_v0, %v1817_v44 }
 0x345   : > { %v1838_v33 = vpop.xlane.xlu1 %1837 }
 0x346   : > { %v1820_v53 = vrot.slane %v1819_v7, 2  ;;  %v1839_v58 = vrot.slane %v1838_v33, 4 }
 0x348   : > { %v1821_v26 = vadd.f32 %v1820_v53, %v1819_v7  ;;  %v1840_v34 = vadd.f32 %v1839_v58, %v1838_v33 }
 0x34a   : > { %v1822_v10 = vrot.slane %v1821_v26, 1  ;;  %v1841_v12 = vrot.slane %v1840_v34, 2 }
 0x34c   : > { %v1823_v63 = vadd.f32 %v1822_v10, %v1821_v26  ;;  %v1842_v60 = vadd.f32 %v1841_v12, %v1840_v34 }
 0x34d   : > { %v1789_v39 = vpop.xlane.xlu0 %1788 }
 0x34e   : > { %v1790_v30 = vrot.slane %v1789_v39, 4  ;;  %v1843_v55 = vrot.slane %v1842_v60, 1 }
 0x350   : > { %v1791_v38 = vadd.f32 %v1790_v30, %v1789_v39  ;;  %v1844_v27 = vadd.f32 %v1843_v55, %v1842_v60 }
 0x351   : > { %v1806_v20 = vpop.xlane.xlu0 %1805 }
 0x352   : > { %v1792_v21 = vrot.slane %v1791_v38, 2  ;;  %v1807_v61 = vrot.slane %v1806_v20, 4 }
 0x354   : > { %v1808_v62 = vadd.f32 %v1807_v61, %v1806_v20  ;;  %v1793_v45 = vadd.f32 %v1792_v21, %v1791_v38 }
 0x356   : > { %v1809_v40 = vrot.slane %v1808_v62, 2  ;;  %v1794_v57 = vrot.slane %v1793_v45, 1 }
 0x358   : > { %v1810_v11 = vadd.f32 %v1809_v40, %v1808_v62  ;;  %v1795_v6 = vadd.f32 %v1794_v57, %v1793_v45 }
 0x35a   : > { %2949 = vpush %v1795_v6  ;;  %v1811_v9 = vrot.slane %v1810_v11, 1 }
 0x35c   : > { %v1812_v31 = vadd.f32 %v1811_v9, %v1810_v11 }
 0x35e   : > { %2951 = vpush %v1812_v31 }
 0x35f   : > { %2953 = vpush %v1823_v63 }
 0x38b   : > { %s2950_s17 = spop %2949 }
 0x38c   : > { %v1797_v28 = vstv %s2950_s17 }
 0x38d   : > { %v1798_v17 = vmul.f32 0.005, %v1797_v28 }
 0x38f   : > { %1800 = vst.msk [vmem:[#allocation10] sm:$0x1] %vm1799_vm10, %v1798_v17  ;;  %s4286_s18 = spop %2951 }
 0x390   : > { %s2954_s20 = spop %2953 }
 0x391   : > { %v1825_v25 = vstv %s2954_s20 }
 0x392   : > { %3035 = vrsqrt.f32 %v1825_v25  ;;  %vm1828_vm11 = vcmp.eq.f32.partialorder %v1825_v25, inf  ;;  %v1831_v59 = vand.u32 2147483648, %v1825_v25  ;;  %vm1830_vm12 = vcmp.eq.f32.partialorder %v1825_v25, 0.0 }
 0x39c   : > { %v3036_v15 = vpop.eup %3035 }
 0x39d   : > { %v1827_v29 = vmul.f32 %v3036_v15, %v1825_v25 }
 0x39f   : > { %v1829_v51 = vsel %vm1828_vm11, %v1825_v25, %v1827_v29 }
 0x3a0   : > { %v1832_v54 = vsel %vm1830_vm12, %v1831_v59, %v1829_v51 }
 0x3a1   : > { %2955 = vpush %v1832_v54 }
 0x3a2   : > { %2957 = vpush %v1844_v27 }
 0x3d2   : > { %s2956_s22 = spop %2955 }
 0x3d3   : > { %s2958_s23 = spop %2957  ;;  %s1834_s11 = smax.f32 %s3193_s29, %s2956_s22 }
 0x3d4   : > { %v1846_v19 = vstv %s2958_s23 }
 0x3d5   : > { %3037 = vrsqrt.f32 %v1846_v19  ;;  %vm1849_vm13 = vcmp.eq.f32.partialorder %v1846_v19, inf  ;;  %v1852_v22 = vand.u32 2147483648, %v1846_v19  ;;  %vm1851_vm14 = vcmp.eq.f32.partialorder %v1846_v19, 0.0 }
 0x3df   : > { %v3038_v8 = vpop.eup %3037 }
 0x3e0   : > { %v1848_v52 = vmul.f32 %v3038_v8, %v1846_v19 }
 0x3e2   : > { %v1850_v36 = vsel %vm1849_vm13, %v1846_v19, %v1848_v52 }
 0x3e3   : > { %v1853_v23 = vsel %vm1851_vm14, %v1852_v22, %v1850_v36 }
 0x3e4   : > { %2959 = vpush %v1853_v23 }
 0x415   : > { %s2960_s28 = spop %2959 }
 0x416   : > { %s1855_s12 = smax.f32 %s3193_s29, %s2960_s28 }
 0x417   : > { %s1856_s9 = smul.f32 %s1855_s12, %s1834_s11 }
 0x419   : > { %v1857_v35 = vstv %s1856_s9 }
 0x41a   : > { %3039 = vrcp.f32 %v1857_v35 }
 0x424   : > { %v3040_v5 = vpop.eup %3039 }
 0x425   : > { %2961 = vpush %v3040_v5 }
 0x456   : > { %s2962_s19 = spop %2961 }
 0x457   : > { %s1860_s21 = smul.f32 %s2962_s19, %s4286_s18 }
 0x459   : > { %v1861_v46 = vstv %s1860_s21  ;;  %s1863_s7 = ssub.f32 1.0, %s1860_s21 }
 0x45a   : > { %v1862_v32 = vmul.f32 %v1861_v46, %v4564_v3 }
 0x45b   : > { %v1864_v37 = vstv %s1863_s7 }
 0x45c   : > { %v1865_v50 = vmul.f32 %v1864_v37, %v4275_v2 }
 0x45e   : > { %v1866_v42 = vadd.f32 %v1865_v50, %v1862_v32 }
 0x460   : > { %v1870_v18 = vrot.slane %v1866_v42, %v1869_v41 }
 0x462   : > { %v1871_v14 = vsel %vm3386_vm2, %v1870_v18, %v4566_v43 }
 0x463   : > { %1872 = vst [vmem:[#allocation11] sm:$0x3] %v1871_v14 }
 0x464 PF: > { %p2982_p3 = scmp.eq.s32.totalorder %s3253_s0, 1  ;;  %s3194_s10 = smov [#allocation10]  }
 0x465   : > { %s1884_s8 = sshll.u32 %s3194_s10, 4  ;;  %s3195_s13 = smov [#allocation11]   ;;  %s1885_s8 = int_to_ptr.vmem [resolvable:$true] %s1884_s8 }
 0x466   : > { %s1898_s26 = sshll.u32 %s3195_s13, 4  ;;  %s3084_s14 = scalar_lea.vmem %s1885_s8, 16  ;;  %s1899_s26 = int_to_ptr.vmem [resolvable:$true] %s1898_s26 }
 0x467   : > { %p3085_p6 = scmp.ne.s32.totalorder %s1885_s8, %s3084_s14  ;;  %s3090_s15 = scalar_lea.vmem %s1885_s8, 32 }
 0x468   : > { %p3091_p8 = scmp.lt.s32.totalorder %s1885_s8, %s1885_s8  ;;  %p3092_p9 = scmp.lt.s32.totalorder %s3090_s15, %s3084_s14 }
 0x469   : > { %p3086_p7 = pnand %p3085_p6, %p2982_p3 }
 0x46a   : > { %p3093_p13 = por %p3092_p9, %p3091_p8 }
 0x46b   : > { %p3087_p11 = pneg %p3086_p7 }
 0x46d   : > { %p3094_p0 = pnand %p3093_p13, %p3087_p11 }
 0x46f   : > { %3097 = shalt.err (!%p3094_p0)
}
 0x470   : > { %s3098_s18 = scalar_lea.hbm %s4357_s4, 16 }
 0x471   : > { %p3099_p1 = scmp.ne.s32.totalorder %s4357_s4, %s3098_s18  ;;  %p3104_p5 = scmp.lt.u32.totalorder %s3098_s18, %s4357_s4 }
 0x473   : > { %p3100_p12 = pnand %p3099_p1, %p2982_p3 }
 0x475   : > { %p3101_p10 = pneg %p3100_p12 }
 0x477   : > { %p3106_p4 = pnand %p3104_p5, %p3101_p10 }
 0x479   : > { %3109 = shalt.err (!%p3106_p4)
}
 0x47a   : > { %2969 = dma.vmem_to_hbm [thread:$0]  (%p2982_p3), %s1885_s8, 16, %s4357_s4, [#allocation7]  }
 0x47b   : > { %s3110_s12 = scalar_lea.vmem %s1899_s26, 32  ;;  %p3117_p11 = scmp.lt.s32.totalorder %s1899_s26, %s1899_s26 }
 0x47c   : > { %p3111_p2 = scmp.ne.s32.totalorder %s1899_s26, %s3110_s12  ;;  %p3118_p8 = scmp.lt.s32.totalorder %s3110_s12, %s3110_s12 }
 0x47e   : > { %p3112_p6 = pnand %p3111_p2, %p2982_p3  ;;  %p3119_p9 = por %p3118_p8, %p3117_p11 }
 0x480   : > { %p3113_p7 = pneg %p3112_p6 }
 0x482   : > { %p3120_p13 = pnand %p3119_p9, %p3113_p7 }
 0x484   : > { %3123 = shalt.err (!%p3120_p13)
}
 0x485   : > { %s3124_s21 = scalar_lea.hbm %s4359_s6, 32 }
 0x486   : > { %p3125_p0 = scmp.ne.s32.totalorder %s4359_s6, %s3124_s21  ;;  %p3130_p10 = scmp.lt.u32.totalorder %s3124_s21, %s4359_s6 }
 0x488   : > { %p3126_p1 = pnand %p3125_p0, %p2982_p3 }
 0x48a   : > { %p3127_p12 = pneg %p3126_p1 }
 0x48c   : > { %p3132_p5 = pnand %p3130_p10, %p3127_p12 }
 0x48e   : > { %3135 = shalt.err (!%p3132_p5)
}
 0x48f   : > { %2971 = dma.vmem_to_hbm [thread:$0]  (%p2982_p3), %s1899_s26, 32, %s4359_s6, [#allocation12]  }
 0x490   : > { %3161 = dma.done.wait (%p2982_p3), [#allocation7], 16  }
 0x491   : > { %3163 = vsyncadd (%p2982_p3), [#allocation7], 4294967280 }
 0x492   : > { %3165 = dma.done.wait (%p2982_p3), [#allocation12], 32  }
 0x493   : > { %3167 = vsyncadd (%p2982_p3), [#allocation12], 4294967264 }
 0x494 PF: > { %p21_p4 = scmp.ge.s32.totalorder %s3256_s27, 4   ;;  %s4568_s23 = smov %s3174_s24 }
 0x495   : > { %s4569_s24 = smov %s3178_s25  ;;  %s4570_s25 = smov %s3266_s30 }
 0x496   : > { %s4571_s26 = smov %s3256_s27  ;;  %23 = sbr.rel (!%p21_p4) target bundleno = 8 (0x8), region = 106 }
 0x49d   :  { %1922 = vsyncpa [#allocation6], 1 }
 0x49e   :  { %1924 = vsyncpa [#allocation6 + $0x1], 1 }
 0x49f   :  { %1925 = vsyncpa [#allocation7], 1 }
 0x4a0   :  { %1927 = vsyncpa [#allocation7 + $0x1], 1 }
 0x4a1   :  { %1928 = vsyncpa [#allocation12], 1 }
 0x4a2   :  { %1929 = vsyncpa [#allocation8], 1 }
 0x4a3   :  { %1931 = vsyncpa [#allocation8 + $0x1], 1 }

</bundles_post_ra>
